<compile_context>
chip_gen: v6e
topology: v6e:2x2x1
jax: 0.10.0
libtpu: 0.0.40
codegen_flags: <defaults>
</compile_context>

<pallas_src>
import jax
import jax.numpy as jnp
from jax.experimental import pallas as pl
from jax.experimental.pallas import tpu as pltpu

# ---- model dims (from lineNN.__init__) ----
D_IN, D_H1, D_H2, D_H3, D_OUT = 784, 392, 196, 49, 10
D_OUT_PAD = 128    # lane-dense output width; sliced back to D_OUT in wrapper
TB_MAX = 1024      # max batch tile (large batches)


def _round_up(v, m):
    return ((v + m - 1) // m) * m


def _pick_tiling(B, tb_max=TB_MAX):
    """Return (tile, padded_batch).  Multiple-of-16 tiles; >=2 grid steps when B > 16."""
    if B <= 16:
        tb = max(8, _round_up(B, 8))
        return tb, tb
    n_steps = max(2, -(-B // tb_max))          # at least 2 steps -> both v7x TCs work
    tb = _round_up(-(-B // n_steps), 16)
    return tb, n_steps * tb


def linenn_kernel(x_ref,
                  w1_ref, b1_ref,
                  w2_ref, b2_ref,
                  w3_ref, b3_ref,
                  w4_ref, b4_ref,
                  o_ref):
    # In-kernel bf16 cast of the f32 input tile (hides under the x DMA).
    x = x_ref[...].astype(jnp.bfloat16)

    h = jnp.dot(x, w1_ref[...], preferred_element_type=jnp.float32) + b1_ref[...]
    h = jnp.maximum(h, 0.0).astype(jnp.bfloat16)

    h = jnp.dot(h, w2_ref[...], preferred_element_type=jnp.float32) + b2_ref[...]
    h = jnp.maximum(h, 0.0).astype(jnp.bfloat16)

    h = jnp.dot(h, w3_ref[...], preferred_element_type=jnp.float32) + b3_ref[...]
    h = jnp.maximum(h, 0.0).astype(jnp.bfloat16)

    y = jnp.dot(h, w4_ref[...], preferred_element_type=jnp.float32) + b4_ref[...]
    o_ref[...] = y.astype(o_ref.dtype)


def prepare_params(params):
    """One-time parameter prep (do NOT call per forward):
    bf16 weights, f32 biases, fc4 weight/bias zero-padded 10 -> 128 lanes."""
    return {
        "w1": params["w1"].astype(jnp.bfloat16),
        "w2": params["w2"].astype(jnp.bfloat16),
        "w3": params["w3"].astype(jnp.bfloat16),
        "w4": jnp.pad(params["w4"],
                      ((0, 0), (0, D_OUT_PAD - D_OUT))).astype(jnp.bfloat16),
        "b1": params["b1"],
        "b2": params["b2"],
        "b3": params["b3"],
        "b4": jnp.pad(params["b4"], ((0, 0), (0, D_OUT_PAD - D_OUT))),
    }


def linenn_forward(x, prepped, *, tb_max=TB_MAX):
    """x: (B, 784) f32.  prepped: output of prepare_params()."""
    B = x.shape[0]
    tb, B_pad = _pick_tiling(B, tb_max)

    if B_pad != B:
        x = jnp.pad(x, ((0, B_pad - B), (0, 0)))

    w1, w2, w3, w4 = prepped["w1"], prepped["w2"], prepped["w3"], prepped["w4"]
    b1, b2, b3, b4 = prepped["b1"], prepped["b2"], prepped["b3"], prepped["b4"]

    def resident(shape):
        # Parameter block = whole array, same block every grid step -> stays in VMEM.
        return pl.BlockSpec(shape, lambda i: (0,) * len(shape))

    flops = 2 * B_pad * (D_IN * D_H1 + D_H1 * D_H2 + D_H2 * D_H3 + D_H3 * D_OUT_PAD)
    param_bytes = sum(int(a.size) * a.dtype.itemsize
                      for a in (w1, b1, w2, b2, w3, b3, w4, b4))
    bytes_accessed = (int(x.size) * x.dtype.itemsize        # f32 x read once, in-kernel cast
                      + param_bytes
                      + B_pad * D_OUT_PAD * 4)              # lane-dense f32 writeback

    out = pl.pallas_call(
        linenn_kernel,
        out_shape=jax.ShapeDtypeStruct((B_pad, D_OUT_PAD), jnp.float32),
        grid=(B_pad // tb,),
        in_specs=[
            pl.BlockSpec((tb, D_IN), lambda i: (i, 0)),
            resident(w1.shape), resident(b1.shape),
            resident(w2.shape), resident(b2.shape),
            resident(w3.shape), resident(b3.shape),
            resident(w4.shape), resident(b4.shape),
        ],
        out_specs=pl.BlockSpec((tb, D_OUT_PAD), lambda i: (i, 0)),
        compiler_params=pltpu.CompilerParams(
            dimension_semantics=("parallel",),   # v7x: shard batch tiles over 2 TCs
            vmem_limit_bytes=32 << 20,           # covers f32 x at the 1024-row tile
        ),
        cost_estimate=pl.CostEstimate(
            flops=flops, transcendentals=0, bytes_accessed=bytes_accessed),
    )(x, w1, b1, w2, b2, w3, b3, w4, b4)

    return out[:B, :D_OUT]


def init_params(key):
    """Deterministic init mimicking PyTorch Linear default (U[-1/sqrt(in), 1/sqrt(in)])."""
    dims = [(D_IN, D_H1), (D_H1, D_H2), (D_H2, D_H3), (D_H3, D_OUT)]
    params = {}
    keys = jax.random.split(key, 2 * len(dims))
    for i, (fan_in, fan_out) in enumerate(dims):
        bound = 1.0 / (fan_in ** 0.5)
        w = jax.random.uniform(keys[2 * i], (fan_in, fan_out),
                               minval=-bound, maxval=bound, dtype=jnp.float32)
        b = jax.random.uniform(keys[2 * i + 1], (1, fan_out),
                               minval=-bound, maxval=bound, dtype=jnp.float32)
        params[f"w{i+1}"] = w
        params[f"b{i+1}"] = b
    return params


def linenn_reference(x, params):
    """Pure-JAX reference mirroring the kernel's bf16-input / f32-accum math."""
    xb = x.astype(jnp.bfloat16)
    w1 = params["w1"].astype(jnp.bfloat16)
    w2 = params["w2"].astype(jnp.bfloat16)
    w3 = params["w3"].astype(jnp.bfloat16)
    w4 = params["w4"].astype(jnp.bfloat16)
    h = jnp.dot(xb, w1, preferred_element_type=jnp.float32) + params["b1"]
    h = jnp.maximum(h, 0.0).astype(jnp.bfloat16)
    h = jnp.dot(h, w2, preferred_element_type=jnp.float32) + params["b2"]
    h = jnp.maximum(h, 0.0).astype(jnp.bfloat16)
    h = jnp.dot(h, w3, preferred_element_type=jnp.float32) + params["b3"]
    h = jnp.maximum(h, 0.0).astype(jnp.bfloat16)
    return jnp.dot(h, w4, preferred_element_type=jnp.float32) + params["b4"]


if __name__ == "__main__":
    key = jax.random.PRNGKey(0)
    k_x, k_p = jax.random.split(key)

    B = 32
    x = jax.random.normal(k_x, (B, D_IN), dtype=jnp.float32)
    params = init_params(k_p)
    prepped = prepare_params(params)   # one-time parameter prep

    out = linenn_forward(x, prepped)
    out = jax.block_until_ready(out)

    ref = linenn_reference(x, params)
    assert out.shape == (B, D_OUT), out.shape
    assert jnp.allclose(out, ref, atol=1e-2, rtol=1e-2), "mismatch vs. pure-JAX reference"

    print("KERNEL_OK")
</pallas_src>

<mosaic_0001>
module attributes {stable_mosaic.version = 11 : i64} {
  func.func @linenn_kernel(%arg0: i32, %arg1: memref<16x784xf32, #tpu.memory_space<vmem>>, %arg2: memref<784x392xbf16, #tpu.memory_space<vmem>>, %arg3: memref<1x392xf32, #tpu.memory_space<vmem>>, %arg4: memref<392x196xbf16, #tpu.memory_space<vmem>>, %arg5: memref<1x196xf32, #tpu.memory_space<vmem>>, %arg6: memref<196x49xbf16, #tpu.memory_space<vmem>>, %arg7: memref<1x49xf32, #tpu.memory_space<vmem>>, %arg8: memref<49x128xbf16, #tpu.memory_space<vmem>>, %arg9: memref<1x128xf32, #tpu.memory_space<vmem>>, %arg10: memref<16x128xf32, #tpu.memory_space<vmem>>) attributes {dimension_semantics = [#tpu.dimension_semantics<parallel>], iteration_bounds = array<i64: 2>, scalar_prefetch = 0 : i64, scratch_operands = 0 : i64, tpu.core_type = #tpu.core_type<tc>, window_params = [{transform_indices = @transform_0, window_bounds = array<i64: 16, 784>}, {pipeline_mode = #tpu.pipeline_mode<synchronous>, transform_indices = @transform_1, window_bounds = array<i64: 784, 392>}, {pipeline_mode = #tpu.pipeline_mode<synchronous>, transform_indices = @transform_2, window_bounds = array<i64: 1, 392>}, {pipeline_mode = #tpu.pipeline_mode<synchronous>, transform_indices = @transform_3, window_bounds = array<i64: 392, 196>}, {pipeline_mode = #tpu.pipeline_mode<synchronous>, transform_indices = @transform_4, window_bounds = array<i64: 1, 196>}, {pipeline_mode = #tpu.pipeline_mode<synchronous>, transform_indices = @transform_5, window_bounds = array<i64: 196, 49>}, {pipeline_mode = #tpu.pipeline_mode<synchronous>, transform_indices = @transform_6, window_bounds = array<i64: 1, 49>}, {pipeline_mode = #tpu.pipeline_mode<synchronous>, transform_indices = @transform_7, window_bounds = array<i64: 49, 128>}, {pipeline_mode = #tpu.pipeline_mode<synchronous>, transform_indices = @transform_8, window_bounds = array<i64: 1, 128>}, {transform_indices = @transform_9, window_bounds = array<i64: 16, 128>}]} {
    %c0 = arith.constant 0 : index
    %c0_0 = arith.constant 0 : index
    %0 = vector.load %arg1[%c0, %c0_0] : memref<16x784xf32, #tpu.memory_space<vmem>>, vector<16x784xf32>
    %1 = arith.truncf %0 : vector<16x784xf32> to vector<16x784xbf16>
    %c0_1 = arith.constant 0 : index
    %c0_2 = arith.constant 0 : index
    %2 = vector.load %arg2[%c0_1, %c0_2] : memref<784x392xbf16, #tpu.memory_space<vmem>>, vector<784x392xbf16>
    %cst = arith.constant dense<0.000000e+00> : vector<16x392xf32>
    %3 = tpu.matmul %1, %2, %cst {dimension_numbers = #tpu.dot_dimension_numbers<[1], [0], [0], [1], [0, 0, 1, 1], [], []>} : vector<16x784xbf16>, vector<784x392xbf16>, vector<16x392xf32> -> vector<16x392xf32>
    %c0_3 = arith.constant 0 : index
    %c0_4 = arith.constant 0 : index
    %4 = vector.load %arg3[%c0_3, %c0_4] : memref<1x392xf32, #tpu.memory_space<vmem>>, vector<1x392xf32>
    %5 = vector.broadcast %4 : vector<1x392xf32> to vector<16x392xf32>
    %6 = arith.addf %3, %5 : vector<16x392xf32>
    %cst_5 = arith.constant 0.000000e+00 : f32
    %7 = vector.broadcast %cst_5 : f32 to vector<16x392xf32>
    %8 = arith.maximumf %6, %7 : vector<16x392xf32>
    %9 = arith.truncf %8 : vector<16x392xf32> to vector<16x392xbf16>
    %c0_6 = arith.constant 0 : index
    %c0_7 = arith.constant 0 : index
    %10 = vector.load %arg4[%c0_6, %c0_7] : memref<392x196xbf16, #tpu.memory_space<vmem>>, vector<392x196xbf16>
    %cst_8 = arith.constant dense<0.000000e+00> : vector<16x196xf32>
    %11 = tpu.matmul %9, %10, %cst_8 {dimension_numbers = #tpu.dot_dimension_numbers<[1], [0], [0], [1], [0, 0, 1, 1], [], []>} : vector<16x392xbf16>, vector<392x196xbf16>, vector<16x196xf32> -> vector<16x196xf32>
    %c0_9 = arith.constant 0 : index
    %c0_10 = arith.constant 0 : index
    %12 = vector.load %arg5[%c0_9, %c0_10] : memref<1x196xf32, #tpu.memory_space<vmem>>, vector<1x196xf32>
    %13 = vector.broadcast %12 : vector<1x196xf32> to vector<16x196xf32>
    %14 = arith.addf %11, %13 : vector<16x196xf32>
    %cst_11 = arith.constant 0.000000e+00 : f32
    %15 = vector.broadcast %cst_11 : f32 to vector<16x196xf32>
    %16 = arith.maximumf %14, %15 : vector<16x196xf32>
    %17 = arith.truncf %16 : vector<16x196xf32> to vector<16x196xbf16>
    %c0_12 = arith.constant 0 : index
    %c0_13 = arith.constant 0 : index
    %18 = vector.load %arg6[%c0_12, %c0_13] : memref<196x49xbf16, #tpu.memory_space<vmem>>, vector<196x49xbf16>
    %cst_14 = arith.constant dense<0.000000e+00> : vector<16x49xf32>
    %19 = tpu.matmul %17, %18, %cst_14 {dimension_numbers = #tpu.dot_dimension_numbers<[1], [0], [0], [1], [0, 0, 1, 1], [], []>} : vector<16x196xbf16>, vector<196x49xbf16>, vector<16x49xf32> -> vector<16x49xf32>
    %c0_15 = arith.constant 0 : index
    %c0_16 = arith.constant 0 : index
    %20 = vector.load %arg7[%c0_15, %c0_16] : memref<1x49xf32, #tpu.memory_space<vmem>>, vector<1x49xf32>
    %21 = vector.broadcast %20 : vector<1x49xf32> to vector<16x49xf32>
    %22 = arith.addf %19, %21 : vector<16x49xf32>
    %cst_17 = arith.constant 0.000000e+00 : f32
    %23 = vector.broadcast %cst_17 : f32 to vector<16x49xf32>
    %24 = arith.maximumf %22, %23 : vector<16x49xf32>
    %25 = arith.truncf %24 : vector<16x49xf32> to vector<16x49xbf16>
    %c0_18 = arith.constant 0 : index
    %c0_19 = arith.constant 0 : index
    %26 = vector.load %arg8[%c0_18, %c0_19] : memref<49x128xbf16, #tpu.memory_space<vmem>>, vector<49x128xbf16>
    %cst_20 = arith.constant dense<0.000000e+00> : vector<16x128xf32>
    %27 = tpu.matmul %25, %26, %cst_20 {dimension_numbers = #tpu.dot_dimension_numbers<[1], [0], [0], [1], [0, 0, 1, 1], [], []>} : vector<16x49xbf16>, vector<49x128xbf16>, vector<16x128xf32> -> vector<16x128xf32>
    %c0_21 = arith.constant 0 : index
    %c0_22 = arith.constant 0 : index
    %28 = vector.load %arg9[%c0_21, %c0_22] : memref<1x128xf32, #tpu.memory_space<vmem>>, vector<1x128xf32>
    %29 = vector.broadcast %28 : vector<1x128xf32> to vector<16x128xf32>
    %30 = arith.addf %27, %29 : vector<16x128xf32>
    %c0_23 = arith.constant 0 : index
    %c0_24 = arith.constant 0 : index
    %31 = vector.load %arg10[%c0_23, %c0_24] : memref<16x128xf32, #tpu.memory_space<vmem>>, vector<16x128xf32>
    tpu.vector_store %arg10[%c0_23, %c0_24], %30 {strides = array<i32>} : memref<16x128xf32, #tpu.memory_space<vmem>>, vector<16x128xf32>,
    return
  }
  func.func @transform_0(%arg0: i32) -> (i32, i32) {
    %c0_i32 = arith.constant 0 : i32
    %c0_i32_0 = arith.constant 0 : i32
    return %arg0, %c0_i32 : i32, i32
  }
  func.func @transform_1(%arg0: i32) -> (i32, i32) {
    %c0_i32 = arith.constant 0 : i32
    %c0_i32_0 = arith.constant 0 : i32
    %c0_i32_1 = arith.constant 0 : i32
    return %c0_i32, %c0_i32_0 : i32, i32
  }
  func.func @transform_2(%arg0: i32) -> (i32, i32) {
    %c0_i32 = arith.constant 0 : i32
    %c0_i32_0 = arith.constant 0 : i32
    %c0_i32_1 = arith.constant 0 : i32
    return %c0_i32, %c0_i32_0 : i32, i32
  }
  func.func @transform_3(%arg0: i32) -> (i32, i32) {
    %c0_i32 = arith.constant 0 : i32
    %c0_i32_0 = arith.constant 0 : i32
    %c0_i32_1 = arith.constant 0 : i32
    return %c0_i32, %c0_i32_0 : i32, i32
  }
  func.func @transform_4(%arg0: i32) -> (i32, i32) {
    %c0_i32 = arith.constant 0 : i32
    %c0_i32_0 = arith.constant 0 : i32
    %c0_i32_1 = arith.constant 0 : i32
    return %c0_i32, %c0_i32_0 : i32, i32
  }
  func.func @transform_5(%arg0: i32) -> (i32, i32) {
    %c0_i32 = arith.constant 0 : i32
    %c0_i32_0 = arith.constant 0 : i32
    %c0_i32_1 = arith.constant 0 : i32
    return %c0_i32, %c0_i32_0 : i32, i32
  }
  func.func @transform_6(%arg0: i32) -> (i32, i32) {
    %c0_i32 = arith.constant 0 : i32
    %c0_i32_0 = arith.constant 0 : i32
    %c0_i32_1 = arith.constant 0 : i32
    return %c0_i32, %c0_i32_0 : i32, i32
  }
  func.func @transform_7(%arg0: i32) -> (i32, i32) {
    %c0_i32 = arith.constant 0 : i32
    %c0_i32_0 = arith.constant 0 : i32
    %c0_i32_1 = arith.constant 0 : i32
    return %c0_i32, %c0_i32_0 : i32, i32
  }
  func.func @transform_8(%arg0: i32) -> (i32, i32) {
    %c0_i32 = arith.constant 0 : i32
    %c0_i32_0 = arith.constant 0 : i32
    %c0_i32_1 = arith.constant 0 : i32
    return %c0_i32, %c0_i32_0 : i32, i32
  }
  func.func @transform_9(%arg0: i32) -> (i32, i32) {
    %c0_i32 = arith.constant 0 : i32
    %c0_i32_0 = arith.constant 0 : i32
    return %arg0, %c0_i32 : i32, i32
  }
}

</mosaic_0001>

<bundles_post_ra>
// kernel: tpu_custom_call.1
= control target key start
LH: loop header
LB: loop body
LE: loop exit
PB: predicated region body
PF: predicated region fallthrough
CT: control target
= control target key end

     0   :  { %14 = vsyncpa [#allocation3], 0  ;;  %s4473_s0 = inlined_call_operand.vmem [shape: f32[32,784], index: 0, kind: input, shape index: {}]   ;;  %s4474_s1 = inlined_call_operand.vmem [shape: bf16[784,392], index: 1, kind: input, shape index: {}]   ;;  %s4475_s2 = inlined_call_operand.vmem [shape: f32[1,392], index: 2, kind: input, shape index: {}]   ;;  %s4476_s3 = inlined_call_operand.vmem [shape: bf16[392,196], index: 3, kind: input, shape index: {}]   ;;  %s4477_s4 = inlined_call_operand.vmem [shape: f32[1,196], index: 4, kind: input, shape index: {}]   ;;  %s4478_s5 = inlined_call_operand.vmem [shape: bf16[196,49], index: 5, kind: input, shape index: {}]   ;;  %s4479_s6 = inlined_call_operand.vmem [shape: f32[1,49], index: 6, kind: input, shape index: {}]   ;;  %s4480_s7 = inlined_call_operand.vmem [shape: bf16[49,128], index: 7, kind: input, shape index: {}]   ;;  %s4481_s8 = inlined_call_operand.vmem [shape: f32[1,128], index: 8, kind: input, shape index: {}]   ;;  %s4482_s9 = inlined_call_operand.hbm [shape: f32[32,128], index: 9, kind: output, shape index: {}]  }
   0x1   :  { %16 = vsyncpa [#allocation3 + $0x1], 0  ;;  %s3498_s30 = smov 0   ;;  %s3500_s10 = smov 0  }
   0x2   :  { %s3502_s11 = smov 0   ;;  %s3504_s12 = smov 0  }
   0x3 LB: > { %s3519_s13 = sadd.s32 4294967295, %s3440_s12   ;;  %s2649_s14 = sadd.s32 4294967294, %s3440_s12   ;;  %s3440_s12 = sphi %s3504_s12, %s4488_s12   ;;  %s3436_s11 = sphi %s3502_s11, %s4487_s11   ;;  %s3432_s10 = sphi %s3500_s10, %s4486_s10   ;;  %s3428_s30 = sphi %s3498_s30, %s4485_s30  }
   0x4   : > { %s3523_s15 = sadd.s32 1, %s3440_s12   ;;  %s223_s16 = sadd.s32 1, %s3436_s11 }
   0x5   : > { %s220_s17 = ssub.s32 %s3440_s12, %s3523_s15  ;;  %p233_p0 = scmp.ne.s32.totalorder %s3436_s11, %s3432_s10 }
   0x6   : > { %p221_p1 = scmp.eq.s32.totalorder %s220_s17, 0  ;;  %p234_p2 = scmp.eq.s32.totalorder %s3519_s13, 1 }
   0x7   : > { %p239_p3 = scmp.ne.s32.totalorder %s3432_s10, %s3428_s30  ;;  %p240_p4 = scmp.eq.s32.totalorder %s2649_s14, 1 }
   0x8   : > { %s3534_s18 = scalar_select %p221_p1, %s3436_s11, %s223_s16  }
   0x9   : > { %p3536_p5 = por %p234_p2, %p233_p0  ;;  %p3540_p6 = por %p240_p4, %p239_p3 }
   0xa   : > { %p2652_p7 = scmp.ge.s32.totalorder %s3440_s12, 1  ;;  %p292_p8 = scmp.lt.s32.totalorder %s3440_s12, 3 }
   0xc   : > { %p293_p9 = pnand %p2652_p7, %p292_p8 }
   0xd   : > { %s2654_s16 = sshll.u32 (!%p293_p9), %s3519_s13, 1  ;;  %s326_s22 = sand.u32 (!%p293_p9), 1, %s3432_s10  }
   0xe   : > { %296 = sbr.rel (%p293_p9) target bundleno = 1051 (0x41b), region = 56  ;;  %p330_p10 = scmp.lt.s32.totalorder (!%p293_p9), %s2654_s16, 3 }
   0xf   : > { %s2653_s23 = sshll.u32 (!%p293_p9), %s326_s22, 4  ;;  %s2932_s26 = sshll.u32 (!%p293_p9), %s3519_s13, 8 }
  0x10   : > { %s328_s25 = scalar_lea.vmem (!%p293_p9), [#allocation2], %s2653_s23  ;;  %s4431_s28 = scalar_lea.hbm (!%p293_p9), %s4482_s9, %s2932_s26 }
  0x11   : > { %s4433_s14 = scalar_lea.sflag (!%p293_p9), [#allocation3], %s326_s22  ;;  %s3445_s13 = smov (!%p293_p9), [#allocation2]  }
  0x12   : > { %s3384_s23 = sshll.u32 (!%p293_p9), %s3445_s13, 4  ;;  %s3385_s23 = int_to_ptr.vmem [resolvable:$false] %s3384_s23 }
  0x13   : > { %v2995_v0 = vld [vmem:[%s4474_s1 + $0xe4] ss:$16 sps:$4 sm:$0xff]   ;;  %v2999_v2 = vld [vmem:[%s4474_s1 + $0xe0] ss:$16 sps:$4 sm:$0xff]   ;;  %s4490_s16 = smov (!%p330_p10, %s2654_s16), 3  ;;  %vm1557_vm0 = vcmask 130048  }
  0x14   : > { %v2997_v1 = vld [vmem:[%s4474_s1 + $0x2e4] ss:$16 sps:$4 sm:$0xff]   ;;  %1561 = vmatprep.subr.bf16.mxu0 %v2995_v0  ;;  %v3000_v3 = vld [vmem:[%s4474_s1 + $0x2e0] ss:$16 sps:$4 sm:$0xff]   ;;  %s2950_s29 = smul.u32 56, %s4490_s16  ;;  %vm2227_vm1 = vcmask 1043456  }
  0x15   : > { %1604 = vmatprep.subr.bf16.mxu1 %v2997_v1  ;;  %v3001_v4 = vld [vmem:[%s4474_s1 + $0xc4] ss:$16 sps:$4 sm:$0xff]   ;;  %1562 = vmatpush1.bf16.msra.mxu0 %v2999_v2  ;;  %v3005_v6 = vld [vmem:[%s4474_s1 + $0xc0] ss:$16 sps:$4 sm:$0xff]   ;;  %vm2223_vm2 = vcmask 64512   ;;  %vm2437_vm3 = vcmask 1041408  }
  0x16   : > { %1605 = vmatpush1.bf16.msra.mxu1 %v3000_v3  ;;  %v3003_v5 = vld [vmem:[%s4474_s1 + $0x2c4] ss:$16 sps:$4 sm:$0xff]   ;;  %1563 = vmatprep.subr.bf16.mxu0 %v3001_v4  ;;  %v3006_v7 = vld [vmem:[%s4474_s1 + $0x2c0] ss:$16 sps:$4 sm:$0xff]   ;;  %s3682_s17 = scalar_lea.vmem %s4473_s0, %s2950_s29  ;;  %vm2524_vm4 = vcmask 1040384   ;;  %vm2433_vm5 = vcmask 556032  }
  0x17   : > { %1606 = vmatprep.subr.bf16.mxu1 %v3003_v5  ;;  %v3007_v8 = vld [vmem:[%s4474_s1 + $0xa4] ss:$16 sps:$4 sm:$0xff]   ;;  %v3011_v10 = vld [vmem:[%s4474_s1 + $0xa0] ss:$16 sps:$4 sm:$0xff]   ;;  %v339_v46 = vld [vmem:[%s3682_s17 + $0x8] sm:$0xff]  ;;  %vm3444_vm6 = vmmov 0  }
  0x18   : > { %v3009_v9 = vld [vmem:[%s4474_s1 + $0x2a4] ss:$16 sps:$4 sm:$0xff]   ;;  %v3012_v11 = vld [vmem:[%s4474_s1 + $0x2a0] ss:$16 sps:$4 sm:$0xff]   ;;  %v341_v48 = vld [vmem:[%s3682_s17 + $0x18] sm:$0xff]  ;;  %vm2520_vm7 = vcmask 400384  }
  0x19   : > { %1564 = vmatpush1.bf16.msra.mxu0 %v3005_v6  ;;  %v3013_v12 = vld [vmem:[%s4474_s1 + $0x84] ss:$16 sps:$4 sm:$0xff]   ;;  %v3017_v14 = vld [vmem:[%s4474_s1 + $0x80] ss:$16 sps:$4 sm:$0xff]   ;;  %s3386_s24 = scalar_lea.vmem %s3385_s23, 512 }
  0x1a   : > { %1607 = vmatpush1.bf16.msra.mxu1 %v3006_v7  ;;  %1565 = vmatprep.subr.bf16.mxu0 %v3007_v8  ;;  %v3015_v13 = vld [vmem:[%s4474_s1 + $0x284] ss:$16 sps:$4 sm:$0xff]   ;;  %v3018_v15 = vld [vmem:[%s4474_s1 + $0x280] ss:$16 sps:$4 sm:$0xff]   ;;  %v345_v7 = vld [vmem:[%s3682_s17 + $0x38] sm:$0xff] }
  0x1b   : > { %1608 = vmatprep.subr.bf16.mxu1 %v3009_v9  ;;  %v3019_v16 = vld [vmem:[%s4474_s1 + $0x64] ss:$16 sps:$4 sm:$0xff]   ;;  %v3023_v18 = vld [vmem:[%s4474_s1 + $0x60] ss:$16 sps:$4 sm:$0xff]   ;;  %v347_v9 = vld [vmem:[%s3682_s17 + $0x48] sm:$0xff] }
  0x1c   : > { %v3021_v17 = vld [vmem:[%s4474_s1 + $0x264] ss:$16 sps:$4 sm:$0xff]   ;;  %v3024_v19 = vld [vmem:[%s4474_s1 + $0x260] ss:$16 sps:$4 sm:$0xff]  }
  0x1d   : > { %1566 = vmatpush1.bf16.msra.mxu0 %v3011_v10  ;;  %v3025_v20 = vld [vmem:[%s4474_s1 + $0x44] ss:$16 sps:$4 sm:$0xff]   ;;  %v3029_v22 = vld [vmem:[%s4474_s1 + $0x40] ss:$16 sps:$4 sm:$0xff]  }
  0x1e   : > { %1609 = vmatpush1.bf16.msra.mxu1 %v3012_v11  ;;  %1567 = vmatprep.subr.bf16.mxu0 %v3013_v12  ;;  %v3027_v21 = vld [vmem:[%s4474_s1 + $0x244] ss:$16 sps:$4 sm:$0xff]   ;;  %v3030_v23 = vld [vmem:[%s4474_s1 + $0x240] ss:$16 sps:$4 sm:$0xff]  }
  0x1f   : > { %1610 = vmatprep.subr.bf16.mxu1 %v3015_v13  ;;  %v3031_v24 = vld [vmem:[%s4474_s1 + $0x24] ss:$16 sps:$4 sm:$0xff]   ;;  %v3035_v26 = vld [vmem:[%s4474_s1 + $0x20] ss:$16 sps:$4 sm:$0xff]  }
  0x20   : > { %v3033_v25 = vld [vmem:[%s4474_s1 + $0x224] ss:$16 sps:$4 sm:$0xff]   ;;  %v3036_v27 = vld [vmem:[%s4474_s1 + $0x220] ss:$16 sps:$4 sm:$0xff]  }
  0x21   : > { %1568 = vmatpush1.bf16.msra.mxu0 %v3017_v14  ;;  %v3037_v28 = vld [vmem:[%s4474_s1 + $0x4] ss:$16 sps:$4 sm:$0xff]   ;;  %v3041_v30 = vld [vmem:[%s4474_s1] ss:$16 sps:$4 sm:$0xff]  }
  0x22   : > { %1611 = vmatpush1.bf16.msra.mxu1 %v3018_v15  ;;  %1569 = vmatprep.subr.bf16.mxu0 %v3019_v16  ;;  %v3039_v29 = vld [vmem:[%s4474_s1 + $0x204] ss:$16 sps:$4 sm:$0xff]   ;;  %v3042_v31 = vld [vmem:[%s4474_s1 + $0x200] ss:$16 sps:$4 sm:$0xff]  }
  0x23   : > { %1612 = vmatprep.subr.bf16.mxu1 %v3021_v17  ;;  %v3043_v32 = vld [vmem:[%s4474_s1 + $0x1e4] ss:$16 sps:$4 sm:$0xff]   ;;  %v3047_v34 = vld [vmem:[%s4474_s1 + $0x1e0] ss:$16 sps:$4 sm:$0xff]   ;;  %v3102_v17 = vld [vmem:[%s4474_s1 + $0xec] ss:$16 sps:$4 sm:$0xff]  }
  0x24   : > { %v3045_v33 = vld [vmem:[%s4474_s1 + $0x3e4] ss:$16 sps:$4 sm:$0xff]   ;;  %v3048_v35 = vld [vmem:[%s4474_s1 + $0x3e0] ss:$16 sps:$4 sm:$0xff]  }
  0x25   : > { %1570 = vmatpush1.bf16.msra.mxu0 %v3023_v18  ;;  %v3049_v36 = vld [vmem:[%s4474_s1 + $0x1c4] ss:$16 sps:$4 sm:$0xff]   ;;  %v3053_v38 = vld [vmem:[%s4474_s1 + $0x1c0] ss:$16 sps:$4 sm:$0xff]  }
  0x26   : > { %1613 = vmatpush1.bf16.msra.mxu1 %v3024_v19  ;;  %1571 = vmatprep.subr.bf16.mxu0 %v3025_v20  ;;  %v3051_v37 = vld [vmem:[%s4474_s1 + $0x3c4] ss:$16 sps:$4 sm:$0xff]   ;;  %v3054_v39 = vld [vmem:[%s4474_s1 + $0x3c0] ss:$16 sps:$4 sm:$0xff]   ;;  %v351_v20 = vld [vmem:[%s3682_s17 + $0x68] sm:$0xff] }
  0x27   : > { %1614 = vmatprep.subr.bf16.mxu1 %v3027_v21  ;;  %v3055_v40 = vld [vmem:[%s4474_s1 + $0x1a4] ss:$16 sps:$4 sm:$0xff]   ;;  %v3059_v42 = vld [vmem:[%s4474_s1 + $0x1a0] ss:$16 sps:$4 sm:$0xff]   ;;  %v3442_v21 = vmov 0  }
  0x28   : > { %v3057_v41 = vld [vmem:[%s4474_s1 + $0x3a4] ss:$16 sps:$4 sm:$0xff]   ;;  %v3060_v43 = vld [vmem:[%s4474_s1 + $0x3a0] ss:$16 sps:$4 sm:$0xff]  }
  0x29   : > { %1572 = vmatpush1.bf16.msra.mxu0 %v3029_v22  ;;  %v3061_v44 = vld [vmem:[%s4474_s1 + $0x184] ss:$16 sps:$4 sm:$0xff]   ;;  %v3065_v50 = vld [vmem:[%s4474_s1 + $0x180] ss:$16 sps:$4 sm:$0xff]  }
  0x2a   : > { %1615 = vmatpush1.bf16.msra.mxu1 %v3030_v23  ;;  %1573 = vmatprep.subr.bf16.mxu0 %v3031_v24  ;;  %v3063_v45 = vld [vmem:[%s4474_s1 + $0x384] ss:$16 sps:$4 sm:$0xff]   ;;  %v3066_v51 = vld [vmem:[%s4474_s1 + $0x380] ss:$16 sps:$4 sm:$0xff]   ;;  %v3100_v24 = vld [vmem:[%s4474_s1 + $0xe8] ss:$16 sps:$4 sm:$0xff]  }
  0x2b   : > { %1616 = vmatprep.subr.bf16.mxu1 %v3033_v25  ;;  %v346_v47 = vld [vmem:[%s3682_s17 + $0x40] sm:$0xff]  ;;  %v348_v49 = vld [vmem:[%s3682_s17 + $0x50] sm:$0xff] }
  0x2c   : > { %v3067_v52 = vld [vmem:[%s4474_s1 + $0x164] ss:$16 sps:$4 sm:$0xff]   ;;  %v3703_v53 = vpack.c.bf16 %v346_v47, %v339_v46  ;;  %v3705_v54 = vpack.c.bf16 %v348_v49, %v341_v48  ;;  %v3071_v56 = vld [vmem:[%s4474_s1 + $0x160] ss:$16 sps:$4 sm:$0xff]   ;;  %v3130_v47 = vld [vmem:[%s4474_s1 + $0x48] ss:$16 sps:$4 sm:$0xff]  }
  0x2d   : > { %1574 = vmatpush1.bf16.msra.mxu0 %v3035_v26  ;;  %v3069_v55 = vld [vmem:[%s4474_s1 + $0x364] ss:$16 sps:$4 sm:$0xff]   ;;  %v3072_v57 = vld [vmem:[%s4474_s1 + $0x360] ss:$16 sps:$4 sm:$0xff]   ;;  %v3108_v26 = vld [vmem:[%s4474_s1 + $0xcc] ss:$16 sps:$4 sm:$0xff]  }
  0x2e   : > { %1617 = vmatpush1.bf16.msra.mxu1 %v3036_v27  ;;  %1575 = vmatprep.subr.bf16.mxu0 %v3037_v28  ;;  %v3073_v58 = vld [vmem:[%s4474_s1 + $0x144] ss:$16 sps:$4 sm:$0xff]   ;;  %v3077_v60 = vld [vmem:[%s4474_s1 + $0x140] ss:$16 sps:$4 sm:$0xff]   ;;  %v3106_v28 = vld [vmem:[%s4474_s1 + $0xc8] ss:$16 sps:$4 sm:$0xff]  }
  0x2f   : > { %1618 = vmatprep.subr.bf16.mxu1 %v3039_v29  ;;  %1593 = vmatprep.mubr.bf16.mxu0 %v3703_v53  ;;  %v3075_v59 = vld [vmem:[%s4474_s1 + $0x344] ss:$16 sps:$4 sm:$0xff]   ;;  %v3078_v61 = vld [vmem:[%s4474_s1 + $0x340] ss:$16 sps:$4 sm:$0xff]   ;;  %v3138_v49 = vld [vmem:[%s4474_s1 + $0x2c] ss:$16 sps:$4 sm:$0xff]  }
  0x30   : > { %1636 = vmatprep.mubr.bf16.mxu1 %v3705_v54  ;;  %v3079_v62 = vld [vmem:[%s4474_s1 + $0x124] ss:$16 sps:$4 sm:$0xff]   ;;  %v3083_v0 = vld [vmem:[%s4474_s1 + $0x120] ss:$16 sps:$4 sm:$0xff]  }
  0x31   : > { %1576 = vmatpush1.bf16.msra.mxu0 %v3041_v30  ;;  %v3081_v63 = vld [vmem:[%s4474_s1 + $0x324] ss:$16 sps:$4 sm:$0xff]   ;;  %v3084_v1 = vld [vmem:[%s4474_s1 + $0x320] ss:$16 sps:$4 sm:$0xff]   ;;  %v3114_v30 = vld [vmem:[%s4474_s1 + $0xac] ss:$16 sps:$4 sm:$0xff]  }
  0x32   : > { %1619 = vmatpush1.bf16.msra.mxu1 %v3042_v31  ;;  %1577 = vmatprep.subr.bf16.mxu0 %v3043_v32  ;;  %v3085_v2 = vld [vmem:[%s4474_s1 + $0x104] ss:$16 sps:$4 sm:$0xff]   ;;  %v3089_v4 = vld [vmem:[%s4474_s1 + $0x100] ss:$16 sps:$4 sm:$0xff]   ;;  %v3112_v32 = vld [vmem:[%s4474_s1 + $0xa8] ss:$16 sps:$4 sm:$0xff]  }
  0x33   : > { %1620 = vmatprep.subr.bf16.mxu1 %v3045_v33  ;;  %v3087_v3 = vld [vmem:[%s4474_s1 + $0x304] ss:$16 sps:$4 sm:$0xff]   ;;  %v3090_v5 = vld [vmem:[%s4474_s1 + $0x300] ss:$16 sps:$4 sm:$0xff]  }
  0x34   : > { %v338_v6 = vld [vmem:[%s3682_s17] sm:$0xff]  ;;  %v340_v8 = vld [vmem:[%s3682_s17 + $0x10] sm:$0xff] }
  0x35   : > { %1578 = vmatpush2.bf16.msra.mxu0 %v3047_v34  ;;  %v3093_v10 = vld [vmem:[%s4474_s1 + $0x4e4] ss:$16 sps:$4 sm:$0xff]   ;;  %v3764_v12 = vpack.c.bf16 %v345_v7, %v338_v6  ;;  %v3766_v13 = vpack.c.bf16 %v347_v9, %v340_v8  ;;  %v3091_v14 = vld [vmem:[%s4474_s1 + $0x4e0] ss:$16 sps:$4 sm:$0xff]   ;;  %v3120_v34 = vld [vmem:[%s4474_s1 + $0x8c] ss:$16 sps:$4 sm:$0xff]  }
  0x36   : > { %1621 = vmatpush2.bf16.msra.mxu1 %v3048_v35  ;;  %1579 = vmatprep.subr.bf16.mxu0 %v3049_v36  ;;  %v3096_v11 = vld [vmem:[%s4474_s1 + $0x604] ss:$16 sps:$4 sm:$0xff]   ;;  %v3094_v15 = vld [vmem:[%s4474_s1 + $0x600] ss:$16 sps:$4 sm:$0xff]   ;;  %v3118_v36 = vld [vmem:[%s4474_s1 + $0x88] ss:$16 sps:$4 sm:$0xff]  }
  0x37   : > { %1622 = vmatprep.subr.bf16.mxu1 %v3051_v37  ;;  %v3099_v16 = vld [vmem:[%s4474_s1 + $0x4c4] ss:$16 sps:$4 sm:$0xff]   ;;  %v3097_v18 = vld [vmem:[%s4474_s1 + $0x4c0] ss:$16 sps:$4 sm:$0xff]   ;;  %v3168_v6 = vld [vmem:[%s4474_s1 + $0x18c] ss:$16 sps:$4 sm:$0xff]  }
  0x38   : > { %v344_v19 = vld [vmem:[%s3682_s17 + $0x30] sm:$0xff]  ;;  %v3166_v8 = vld [vmem:[%s4474_s1 + $0x188] ss:$16 sps:$4 sm:$0xff]  }
  0x39   : > { %1580 = vmatpush2.bf16.msra.mxu0 %v3053_v38  ;;  %v3105_v22 = vld [vmem:[%s4474_s1 + $0x4a4] ss:$16 sps:$4 sm:$0xff]   ;;  %v3791_v23 = vpack.c.bf16 %v351_v20, %v344_v19  ;;  %v3103_v25 = vld [vmem:[%s4474_s1 + $0x4a0] ss:$16 sps:$4 sm:$0xff]   ;;  %v3126_v38 = vld [vmem:[%s4474_s1 + $0x6c] ss:$16 sps:$4 sm:$0xff]  }
  0x3a   : > { %1623 = vmatpush2.bf16.msra.mxu1 %v3054_v39  ;;  %1581 = vmatprep.subr.bf16.mxu0 %v3055_v40  ;;  %v3111_v27 = vld [vmem:[%s4474_s1 + $0x484] ss:$16 sps:$4 sm:$0xff]   ;;  %v3109_v29 = vld [vmem:[%s4474_s1 + $0x480] ss:$16 sps:$4 sm:$0xff]   ;;  %v3124_v40 = vld [vmem:[%s4474_s1 + $0x68] ss:$16 sps:$4 sm:$0xff]  }
  0x3b   : > { %1624 = vmatprep.subr.bf16.mxu1 %v3057_v41  ;;  %v3117_v31 = vld [vmem:[%s4474_s1 + $0x464] ss:$16 sps:$4 sm:$0xff]   ;;  %v3115_v33 = vld [vmem:[%s4474_s1 + $0x460] ss:$16 sps:$4 sm:$0xff]   ;;  %v343_v41 = vld [vmem:[%s3682_s17 + $0x28] sm:$0xff] }
  0x3c   : > { %v3123_v35 = vld [vmem:[%s4474_s1 + $0x444] ss:$16 sps:$4 sm:$0xff]   ;;  %v3121_v37 = vld [vmem:[%s4474_s1 + $0x440] ss:$16 sps:$4 sm:$0xff]  }
  0x3d   : > { %1582 = vmatpush2.bf16.msra.mxu0 %v3059_v42  ;;  %v3129_v39 = vld [vmem:[%s4474_s1 + $0x424] ss:$16 sps:$4 sm:$0xff]   ;;  %v3133_v48 = vld [vmem:[%s4474_s1 + $0x400] ss:$16 sps:$4 sm:$0xff]  }
  0x3e   : > { %1625 = vmatpush2.bf16.msra.mxu1 %v3060_v43  ;;  %1583 = vmatprep.subr.bf16.mxu0 %v3061_v44  ;;  %v350_v42 = vld [vmem:[%s3682_s17 + $0x60] sm:$0xff] }
  0x3f   : > { %1626 = vmatprep.subr.bf16.mxu1 %v3063_v45  ;;  %v3127_v43 = vld [vmem:[%s4474_s1 + $0x420] ss:$16 sps:$4 sm:$0xff]   ;;  %v3852_v44 = vpack.c.bf16 %v350_v42, %v343_v41  ;;  %v3132_v45 = vld [vmem:[%s4474_s1 + $0x4c] ss:$16 sps:$4 sm:$0xff]   ;;  %v3135_v46 = vld [vmem:[%s4474_s1 + $0x404] ss:$16 sps:$4 sm:$0xff]  }
  0x40   : > { %v3171_v7 = vld [vmem:[%s4474_s1 + $0x544] ss:$16 sps:$4 sm:$0xff]   ;;  %v3169_v9 = vld [vmem:[%s4474_s1 + $0x540] ss:$16 sps:$4 sm:$0xff]   ;;  %v3213_v41 = vld [vmem:[%s4474_s1 + $0x26c] ss:$16 sps:$4 sm:$0xff]  }
  0x41   : > { %1584 = vmatpush2.bf16.msra.mxu0 %v3065_v50  ;;  %v3141_v50 = vld [vmem:[%s4474_s1 + $0x5e4] ss:$16 sps:$4 sm:$0xff]   ;;  %v3181_v19 = vld [vmem:[%s4474_s1 + $0x500] ss:$16 sps:$4 sm:$0xff]   ;;  %v3208_v42 = vld [vmem:[%s4474_s1 + $0x4a8] ss:$16 sps:$4 sm:$0xff]  }
  0x42   : > { %1627 = vmatpush2.bf16.msra.mxu1 %v3066_v51  ;;  %1585 = vmatprep.subr.bf16.mxu0 %v3067_v52  ;;  %v3136_v51 = vld [vmem:[%s4474_s1 + $0x28] ss:$16 sps:$4 sm:$0xff]   ;;  %v3139_v52 = vld [vmem:[%s4474_s1 + $0x5e0] ss:$16 sps:$4 sm:$0xff]  }
  0x43   : > { %1628 = vmatprep.subr.bf16.mxu1 %v3069_v55  ;;  %v3147_v55 = vld [vmem:[%s4474_s1 + $0x5c4] ss:$16 sps:$4 sm:$0xff]  }
  0x44   : > { %v342_v20 = vld [vmem:[%s3682_s17 + $0x20] sm:$0xff] }
  0x45   : > { %1586 = vmatpush2.bf16.msra.mxu0 %v3071_v56  ;;  %v3142_v56 = vld [vmem:[%s4474_s1 + $0x8] ss:$16 sps:$4 sm:$0xff]  }
  0x46   : > { %1629 = vmatpush2.bf16.msra.mxu1 %v3072_v57  ;;  %1587 = vmatprep.subr.bf16.mxu0 %v3073_v58  ;;  %v3145_v57 = vld [vmem:[%s4474_s1 + $0x5c0] ss:$16 sps:$4 sm:$0xff]   ;;  %v3150_v58 = vld [vmem:[%s4474_s1 + $0x1ec] ss:$16 sps:$4 sm:$0xff]  }
  0x47   : > { %1630 = vmatprep.subr.bf16.mxu1 %v3075_v59  ;;  %v3153_v59 = vld [vmem:[%s4474_s1 + $0x5a4] ss:$16 sps:$4 sm:$0xff]  }
  0x49   : > { %1588 = vmatpush2.bf16.msra.mxu0 %v3077_v60  ;;  %v3148_v60 = vld [vmem:[%s4474_s1 + $0x1e8] ss:$16 sps:$4 sm:$0xff]  }
  0x4a   : > { %1631 = vmatpush2.bf16.msra.mxu1 %v3078_v61  ;;  %1589 = vmatprep.subr.bf16.mxu0 %v3079_v62  ;;  %v3151_v61 = vld [vmem:[%s4474_s1 + $0x5a0] ss:$16 sps:$4 sm:$0xff]   ;;  %v3156_v62 = vld [vmem:[%s4474_s1 + $0x1cc] ss:$16 sps:$4 sm:$0xff]  }
  0x4b   : > { %1632 = vmatprep.subr.bf16.mxu1 %v3081_v63  ;;  %v3159_v63 = vld [vmem:[%s4474_s1 + $0x584] ss:$16 sps:$4 sm:$0xff]  }
  0x4d   : > { %1590 = vmatpush2.bf16.msra.mxu0 %v3083_v0  ;;  %v3154_v0 = vld [vmem:[%s4474_s1 + $0x1c8] ss:$16 sps:$4 sm:$0xff]  }
  0x4e   : > { %1633 = vmatpush2.bf16.msra.mxu1 %v3084_v1  ;;  %1591 = vmatprep.subr.bf16.mxu0 %v3085_v2  ;;  %v3157_v1 = vld [vmem:[%s4474_s1 + $0x580] ss:$16 sps:$4 sm:$0xff]   ;;  %v3162_v2 = vld [vmem:[%s4474_s1 + $0x1ac] ss:$16 sps:$4 sm:$0xff]  }
  0x4f   : > { %1634 = vmatprep.subr.bf16.mxu1 %v3087_v3  ;;  %v3165_v3 = vld [vmem:[%s4474_s1 + $0x564] ss:$16 sps:$4 sm:$0xff]  }
  0x51   : > { %1592 = vmatpush2.bf16.msra.mxu0 %v3089_v4  ;;  %v3160_v4 = vld [vmem:[%s4474_s1 + $0x1a8] ss:$16 sps:$4 sm:$0xff]  }
  0x52   : > { %1635 = vmatpush2.bf16.msra.mxu1 %v3090_v5  ;;  %1647 = vmatprep.subr.bf16.mxu0 %v3093_v10  ;;  %v3163_v5 = vld [vmem:[%s4474_s1 + $0x560] ss:$16 sps:$4 sm:$0xff]   ;;  %v3174_v10 = vld [vmem:[%s4474_s1 + $0x16c] ss:$16 sps:$4 sm:$0xff]  }
  0x53   : > { %1704 = vmatprep.subr.bf16.mxu1 %v3096_v11  ;;  %v3177_v11 = vld [vmem:[%s4474_s1 + $0x524] ss:$16 sps:$4 sm:$0xff]  }
  0x54   : > { %1594 = vmatmul.mubr.bf16.vlgmr.msra.gmra.mxu0 %v3764_v12 }
  0x55   : > { %1637 = vmatmul.mubr.bf16.vlgmr.msra.gmra.mxu1 %v3766_v13  ;;  %1648 = vmatpush1.bf16.msra.mxu0 %v3091_v14  ;;  %v3172_v14 = vld [vmem:[%s4474_s1 + $0x168] ss:$16 sps:$4 sm:$0xff]  }
  0x56   : > { %1705 = vmatpush1.bf16.msra.mxu1 %v3094_v15  ;;  %1649 = vmatprep.subr.bf16.mxu0 %v3099_v16  ;;  %v3175_v15 = vld [vmem:[%s4474_s1 + $0x520] ss:$16 sps:$4 sm:$0xff]   ;;  %v3180_v16 = vld [vmem:[%s4474_s1 + $0x14c] ss:$16 sps:$4 sm:$0xff]  }
  0x57   : > { %1722 = vmatprep.mubr.bf16.mxu1 %v3442_v21  ;;  %1733 = vmatprep.subr.bf16.mxu1 %v3102_v17  ;;  %v3183_v17 = vld [vmem:[%s4474_s1 + $0x504] ss:$16 sps:$4 sm:$0xff]  }
  0x58   : > { %1679 = vmatprep.mubr.bf16.mxu0 %v3852_v44 }
  0x59   : > { %1650 = vmatpush1.bf16.msra.mxu0 %v3097_v18  ;;  %v3178_v18 = vld [vmem:[%s4474_s1 + $0x148] ss:$16 sps:$4 sm:$0xff]  }
  0x5a   : > { %1651 = vmatprep.subr.bf16.mxu0 %v3105_v22  ;;  %v349_v22 = vld [vmem:[%s3682_s17 + $0x58] sm:$0xff]  ;;  %s2587_s17 = sshll.u32 %s328_s25, 4  ;;  %s4426_s17 = int_to_ptr.vmem [resolvable:$true] %s2587_s17 }
  0x5b   : > { %s3380_s21 = scalar_lea.vmem %s4426_s17, 256  ;;  %p3387_p0 = scmp.lt.s32.totalorder %s4426_s17, %s3385_s23 }
  0x5c   : > { %p3381_p11 = scmp.ne.s32.totalorder %s4426_s17, %s3380_s21  ;;  %p3388_p1 = scmp.lt.s32.totalorder %s3386_s24, %s3380_s21 }
  0x5d   : > { %2852 = vmatmul.mubr.msk.bf16.vlgmr.msra.gmra.mxu1 %vm1557_vm0, %v3791_v23  ;;  %1652 = vmatpush1.bf16.msra.mxu0 %v3103_v25  ;;  %v3189_v25 = vld [vmem:[%s4474_s1 + $0x2ec] ss:$16 sps:$4 sm:$0xff]  }
  0x5e   : > { %1734 = vmatpush1.bf16.msra.mxu1 %v3100_v24  ;;  %1653 = vmatprep.subr.bf16.mxu0 %v3111_v27  ;;  %v3186_v24 = vld [vmem:[%s4474_s1 + $0x12c] ss:$16 sps:$4 sm:$0xff]   ;;  %v3184_v27 = vld [vmem:[%s4474_s1 + $0x128] ss:$16 sps:$4 sm:$0xff]   ;;  %p3382_p12 = pnand %p3381_p11, %p3536_p5  ;;  %p3389_p2 = por %p3388_p1, %p3387_p0 }
  0x5f   : > { %1735 = vmatprep.subr.bf16.mxu1 %v3108_v26  ;;  %1765 = vmatprep.mubr.bf16.mxu1 %v3703_v53  ;;  %v3144_v53 = vld [vmem:[%s4474_s1 + $0xc] ss:$16 sps:$4 sm:$0xff]   ;;  %v3971_v26 = vpack.c.bf16 %v349_v22, %v342_v20  ;;  %v3268_v20 = vld [vmem:[%s4474_s1 + $0x568] ss:$16 sps:$4 sm:$0xff]  }
  0x60   : > { %v3271_v22 = vld [vmem:[%s4474_s1 + $0x328] ss:$16 sps:$4 sm:$0xff]   ;;  %p3383_p13 = pneg %p3382_p12 }
  0x61   : > { %1654 = vmatpush1.bf16.msra.mxu0 %v3109_v29  ;;  %v3192_v29 = vld [vmem:[%s4474_s1 + $0x10c] ss:$16 sps:$4 sm:$0xff]  }
  0x62   : > { %1736 = vmatpush1.bf16.msra.mxu1 %v3106_v28  ;;  %1655 = vmatprep.subr.bf16.mxu0 %v3117_v31  ;;  %v3187_v28 = vld [vmem:[%s4474_s1 + $0x2e8] ss:$16 sps:$4 sm:$0xff]   ;;  %p3390_p3 = pnand %p3389_p2, %p3383_p13 }
  0x63   : > { %1737 = vmatprep.subr.bf16.mxu1 %v3114_v30  ;;  %v3195_v30 = vld [vmem:[%s4474_s1 + $0x2cc] ss:$16 sps:$4 sm:$0xff]   ;;  %v3190_v31 = vld [vmem:[%s4474_s1 + $0x108] ss:$16 sps:$4 sm:$0xff]  }
  0x65   : > { %1656 = vmatpush1.bf16.msra.mxu0 %v3115_v33  ;;  %v3198_v33 = vld [vmem:[%s4474_s1 + $0x4ec] ss:$16 sps:$4 sm:$0xff]  }
  0x66   : > { %1738 = vmatpush1.bf16.msra.mxu1 %v3112_v32  ;;  %1657 = vmatprep.subr.bf16.mxu0 %v3123_v35  ;;  %v3193_v32 = vld [vmem:[%s4474_s1 + $0x2c8] ss:$16 sps:$4 sm:$0xff]  }
  0x67   : > { %1739 = vmatprep.subr.bf16.mxu1 %v3120_v34  ;;  %v3201_v34 = vld [vmem:[%s4474_s1 + $0x2ac] ss:$16 sps:$4 sm:$0xff]   ;;  %v3196_v35 = vld [vmem:[%s4474_s1 + $0x4e8] ss:$16 sps:$4 sm:$0xff]  }
  0x69   : > { %1658 = vmatpush1.bf16.msra.mxu0 %v3121_v37  ;;  %v3204_v37 = vld [vmem:[%s4474_s1 + $0x4cc] ss:$16 sps:$4 sm:$0xff]  }
  0x6a   : > { %1740 = vmatpush1.bf16.msra.mxu1 %v3118_v36  ;;  %1659 = vmatprep.subr.bf16.mxu0 %v3129_v39  ;;  %v3199_v36 = vld [vmem:[%s4474_s1 + $0x2a8] ss:$16 sps:$4 sm:$0xff]  }
  0x6b   : > { %1741 = vmatprep.subr.bf16.mxu1 %v3126_v38  ;;  %v3207_v38 = vld [vmem:[%s4474_s1 + $0x28c] ss:$16 sps:$4 sm:$0xff]   ;;  %v3202_v39 = vld [vmem:[%s4474_s1 + $0x4c8] ss:$16 sps:$4 sm:$0xff]  }
  0x6d   : > { %1660 = vmatpush1.bf16.msra.mxu0 %v3127_v43  ;;  %v3216_v43 = vld [vmem:[%s4474_s1 + $0x48c] ss:$16 sps:$4 sm:$0xff]  }
  0x6e   : > { %1742 = vmatpush1.bf16.msra.mxu1 %v3124_v40  ;;  %1661 = vmatprep.subr.bf16.mxu0 %v3135_v46  ;;  %v3210_v40 = vld [vmem:[%s4474_s1 + $0x4ac] ss:$16 sps:$4 sm:$0xff]   ;;  %v3214_v46 = vld [vmem:[%s4474_s1 + $0x488] ss:$16 sps:$4 sm:$0xff]  }
  0x6f   : > { %1743 = vmatprep.subr.bf16.mxu1 %v3132_v45  ;;  %v3219_v45 = vld [vmem:[%s4474_s1 + $0x24c] ss:$16 sps:$4 sm:$0xff]  }
  0x71   : > { %1662 = vmatpush1.bf16.msra.mxu0 %v3133_v48  ;;  %v3225_v48 = vld [vmem:[%s4474_s1 + $0x22c] ss:$16 sps:$4 sm:$0xff]  }
  0x72   : > { %1744 = vmatpush1.bf16.msra.mxu1 %v3130_v47  ;;  %1663 = vmatprep.subr.bf16.mxu0 %v3141_v50  ;;  %v3222_v47 = vld [vmem:[%s4474_s1 + $0x46c] ss:$16 sps:$4 sm:$0xff]   ;;  %v3223_v50 = vld [vmem:[%s4474_s1 + $0x228] ss:$16 sps:$4 sm:$0xff]  }
  0x73   : > { %1745 = vmatprep.subr.bf16.mxu1 %v3138_v49  ;;  %v3220_v49 = vld [vmem:[%s4474_s1 + $0x468] ss:$16 sps:$4 sm:$0xff]  }
  0x75   : > { %1664 = vmatpush2.bf16.msra.mxu0 %v3139_v52  ;;  %v3231_v52 = vld [vmem:[%s4474_s1 + $0x20c] ss:$16 sps:$4 sm:$0xff]  }
  0x76   : > { %1746 = vmatpush1.bf16.msra.mxu1 %v3136_v51  ;;  %1665 = vmatprep.subr.bf16.mxu0 %v3147_v55  ;;  %v3228_v51 = vld [vmem:[%s4474_s1 + $0x44c] ss:$16 sps:$4 sm:$0xff]   ;;  %v3229_v55 = vld [vmem:[%s4474_s1 + $0x208] ss:$16 sps:$4 sm:$0xff]  }
  0x77   : > { %1747 = vmatprep.subr.bf16.mxu1 %v3144_v53  ;;  %v3226_v53 = vld [vmem:[%s4474_s1 + $0x448] ss:$16 sps:$4 sm:$0xff]  }
  0x79   : > { %1666 = vmatpush2.bf16.msra.mxu0 %v3145_v57  ;;  %v3237_v57 = vld [vmem:[%s4474_s1 + $0x3ec] ss:$16 sps:$4 sm:$0xff]  }
  0x7a   : > { %1748 = vmatpush1.bf16.msra.mxu1 %v3142_v56  ;;  %1667 = vmatprep.subr.bf16.mxu0 %v3153_v59  ;;  %v3234_v56 = vld [vmem:[%s4474_s1 + $0x42c] ss:$16 sps:$4 sm:$0xff]   ;;  %v3235_v59 = vld [vmem:[%s4474_s1 + $0x3e8] ss:$16 sps:$4 sm:$0xff]  }
  0x7b   : > { %1749 = vmatprep.subr.bf16.mxu1 %v3150_v58  ;;  %v3232_v58 = vld [vmem:[%s4474_s1 + $0x428] ss:$16 sps:$4 sm:$0xff]  }
  0x7d   : > { %1668 = vmatpush2.bf16.msra.mxu0 %v3151_v61  ;;  %v3243_v61 = vld [vmem:[%s4474_s1 + $0x3cc] ss:$16 sps:$4 sm:$0xff]  }
  0x7e   : > { %1750 = vmatpush2.bf16.msra.mxu1 %v3148_v60  ;;  %1669 = vmatprep.subr.bf16.mxu0 %v3159_v63  ;;  %v3240_v60 = vld [vmem:[%s4474_s1 + $0x40c] ss:$16 sps:$4 sm:$0xff]   ;;  %v3241_v63 = vld [vmem:[%s4474_s1 + $0x3c8] ss:$16 sps:$4 sm:$0xff]  }
  0x7f   : > { %1751 = vmatprep.subr.bf16.mxu1 %v3156_v62  ;;  %v3238_v62 = vld [vmem:[%s4474_s1 + $0x408] ss:$16 sps:$4 sm:$0xff]  }
  0x81   : > { %1670 = vmatpush2.bf16.msra.mxu0 %v3157_v1  ;;  %v3249_v1 = vld [vmem:[%s4474_s1 + $0x3ac] ss:$16 sps:$4 sm:$0xff]  }
  0x82   : > { %1752 = vmatpush2.bf16.msra.mxu1 %v3154_v0  ;;  %1671 = vmatprep.subr.bf16.mxu0 %v3165_v3  ;;  %v3246_v0 = vld [vmem:[%s4474_s1 + $0x5ec] ss:$16 sps:$4 sm:$0xff]   ;;  %v3247_v3 = vld [vmem:[%s4474_s1 + $0x3a8] ss:$16 sps:$4 sm:$0xff]  }
  0x83   : > { %1753 = vmatprep.subr.bf16.mxu1 %v3162_v2  ;;  %v3244_v2 = vld [vmem:[%s4474_s1 + $0x5e8] ss:$16 sps:$4 sm:$0xff]  }
  0x85   : > { %1672 = vmatpush2.bf16.msra.mxu0 %v3163_v5  ;;  %v3255_v5 = vld [vmem:[%s4474_s1 + $0x38c] ss:$16 sps:$4 sm:$0xff]  }
  0x86   : > { %1754 = vmatpush2.bf16.msra.mxu1 %v3160_v4  ;;  %1673 = vmatprep.subr.bf16.mxu0 %v3171_v7  ;;  %v3252_v4 = vld [vmem:[%s4474_s1 + $0x5cc] ss:$16 sps:$4 sm:$0xff]   ;;  %v3253_v7 = vld [vmem:[%s4474_s1 + $0x388] ss:$16 sps:$4 sm:$0xff]  }
  0x87   : > { %1755 = vmatprep.subr.bf16.mxu1 %v3168_v6  ;;  %v3250_v6 = vld [vmem:[%s4474_s1 + $0x5c8] ss:$16 sps:$4 sm:$0xff]  }
  0x89   : > { %1674 = vmatpush2.bf16.msra.mxu0 %v3169_v9  ;;  %v3261_v9 = vld [vmem:[%s4474_s1 + $0x36c] ss:$16 sps:$4 sm:$0xff]  }
  0x8a   : > { %1756 = vmatpush2.bf16.msra.mxu1 %v3166_v8  ;;  %1675 = vmatprep.subr.bf16.mxu0 %v3177_v11  ;;  %v3258_v8 = vld [vmem:[%s4474_s1 + $0x5ac] ss:$16 sps:$4 sm:$0xff]   ;;  %v3259_v11 = vld [vmem:[%s4474_s1 + $0x368] ss:$16 sps:$4 sm:$0xff]  }
  0x8b   : > { %1757 = vmatprep.subr.bf16.mxu1 %v3174_v10  ;;  %v3256_v10 = vld [vmem:[%s4474_s1 + $0x5a8] ss:$16 sps:$4 sm:$0xff]  }
  0x8d   : > { %1676 = vmatpush2.bf16.msra.mxu0 %v3175_v15  ;;  %v3267_v15 = vld [vmem:[%s4474_s1 + $0x34c] ss:$16 sps:$4 sm:$0xff]  }
  0x8e   : > { %1758 = vmatpush2.bf16.msra.mxu1 %v3172_v14  ;;  %1677 = vmatprep.subr.bf16.mxu0 %v3183_v17  ;;  %v3264_v14 = vld [vmem:[%s4474_s1 + $0x58c] ss:$16 sps:$4 sm:$0xff]   ;;  %v3265_v17 = vld [vmem:[%s4474_s1 + $0x348] ss:$16 sps:$4 sm:$0xff]  }
  0x8f   : > { %1759 = vmatprep.subr.bf16.mxu1 %v3180_v16  ;;  %v3262_v16 = vld [vmem:[%s4474_s1 + $0x588] ss:$16 sps:$4 sm:$0xff]  }
  0x91   : > { %1678 = vmatpush2.bf16.msra.mxu0 %v3181_v19  ;;  %v3273_v19 = vld [vmem:[%s4474_s1 + $0x32c] ss:$16 sps:$4 sm:$0xff]  }
  0x92   : > { %1760 = vmatpush2.bf16.msra.mxu1 %v3178_v18  ;;  %1776 = vmatprep.subr.bf16.mxu0 %v3189_v25  ;;  %v3270_v18 = vld [vmem:[%s4474_s1 + $0x56c] ss:$16 sps:$4 sm:$0xff]  }
  0x93   : > { %1761 = vmatprep.subr.bf16.mxu1 %v3186_v24  ;;  %v3276_v24 = vld [vmem:[%s4474_s1 + $0x54c] ss:$16 sps:$4 sm:$0xff]  }
  0x94   : > { %1680 = vmatmul.mubr.bf16.vlgmr.msra.gmra.mxu0 %v3971_v26  ;;  %v3279_v25 = vld [vmem:[%s4474_s1 + $0x30c] ss:$16 sps:$4 sm:$0xff]  }
  0x95   : > { %1777 = vmatpush1.bf16.msra.mxu0 %v3187_v28  ;;  %1808 = vmatprep.mubr.bf16.mxu0 %v3705_v54  ;;  %v3205_v54 = vld [vmem:[%s4474_s1 + $0x288] ss:$16 sps:$4 sm:$0xff]  }
  0x96   : > { %1762 = vmatpush2.bf16.msra.mxu1 %v3184_v27  ;;  %1778 = vmatprep.subr.bf16.mxu0 %v3195_v30  ;;  %v3274_v27 = vld [vmem:[%s4474_s1 + $0x548] ss:$16 sps:$4 sm:$0xff]   ;;  %v3285_v30 = vld [vmem:[%s4474_s1 + $0x60c] ss:$16 sps:$4 sm:$0xff]  }
  0x97   : > { %1763 = vmatprep.subr.bf16.mxu1 %v3192_v29  ;;  %v3277_v28 = vld [vmem:[%s4474_s1 + $0x308] ss:$16 sps:$4 sm:$0xff]   ;;  %v3282_v29 = vld [vmem:[%s4474_s1 + $0x52c] ss:$16 sps:$4 sm:$0xff]  }
  0x99   : > { %1779 = vmatpush1.bf16.msra.mxu0 %v3193_v32  ;;  %v3283_v32 = vld [vmem:[%s4474_s1 + $0x608] ss:$16 sps:$4 sm:$0xff]  }
  0x9a   : > { %1764 = vmatpush2.bf16.msra.mxu1 %v3190_v31  ;;  %1780 = vmatprep.subr.bf16.mxu0 %v3201_v34  ;;  %v3280_v31 = vld [vmem:[%s4474_s1 + $0x528] ss:$16 sps:$4 sm:$0xff]   ;;  %v3291_v34 = vld [vmem:[%s4476_s3 + $0x74] ss:$8 sps:$4 sm:$0xff]  }
  0x9b   : > { %1819 = vmatprep.subr.bf16.mxu1 %v3198_v33  ;;  %v3288_v33 = vld [vmem:[%s4474_s1 + $0x50c] ss:$16 sps:$4 sm:$0xff]  }
  0x9d   : > { %1766 = vmatmul.mubr.bf16.vlgmr.msra.gmra.mxu1 %v3764_v12  ;;  %1781 = vmatpush1.bf16.msra.mxu0 %v3199_v36  ;;  %v3211_v12 = vld [vmem:[%s4474_s1 + $0x268] ss:$16 sps:$4 sm:$0xff]  }
  0x9e   : > { %1820 = vmatpush1.bf16.msra.mxu1 %v3196_v35  ;;  %1782 = vmatprep.subr.bf16.mxu0 %v3207_v38  ;;  %v3286_v35 = vld [vmem:[%s4474_s1 + $0x508] ss:$16 sps:$4 sm:$0xff]   ;;  %v3297_v38 = vld [vmem:[%s4476_s3 + $0x54] ss:$8 sps:$4 sm:$0xff]  }
  0x9f   : > { %1821 = vmatprep.subr.bf16.mxu1 %v3204_v37  ;;  %1851 = vmatprep.mubr.bf16.mxu1 %v3852_v44  ;;  %v3217_v44 = vld [vmem:[%s4474_s1 + $0x248] ss:$16 sps:$4 sm:$0xff]   ;;  %v3294_v37 = vld [vmem:[%s4476_s3 + $0x64] ss:$8 sps:$4 sm:$0xff]  }
  0xa0   : > { %v3289_v36 = vld [vmem:[%s4476_s3 + $0x70] ss:$8 sps:$4 sm:$0xff]  }
  0xa1   : > { %1783 = vmatpush1.bf16.msra.mxu0 %v3205_v54  ;;  %v3339_v54 = vld [vmem:[%s4476_s3 + $0x174] ss:$8 sps:$4 sm:$0xff]  }
  0xa2   : > { %1822 = vmatpush1.bf16.msra.mxu1 %v3202_v39  ;;  %1784 = vmatprep.subr.bf16.mxu0 %v3213_v41  ;;  %v3295_v39 = vld [vmem:[%s4476_s3 + $0x50] ss:$8 sps:$4 sm:$0xff]   ;;  %v3342_v41 = vld [vmem:[%s4476_s3 + $0x164] ss:$8 sps:$4 sm:$0xff]  }
  0xa3   : > { %1823 = vmatprep.subr.bf16.mxu1 %v3210_v40  ;;  %v3298_v40 = vld [vmem:[%s4476_s3 + $0x40] ss:$8 sps:$4 sm:$0xff]  }
  0xa5   : > { %1785 = vmatpush1.bf16.msra.mxu0 %v3211_v12  ;;  %v3340_v12 = vld [vmem:[%s4476_s3 + $0x160] ss:$8 sps:$4 sm:$0xff]  }
  0xa6   : > { %1824 = vmatpush1.bf16.msra.mxu1 %v3208_v42  ;;  %1786 = vmatprep.subr.bf16.mxu0 %v3219_v45  ;;  %v3303_v42 = vld [vmem:[%s4476_s3 + $0x34] ss:$8 sps:$4 sm:$0xff]   ;;  %v3301_v45 = vld [vmem:[%s4476_s3 + $0x30] ss:$8 sps:$4 sm:$0xff]  }
  0xa7   : > { %1825 = vmatprep.subr.bf16.mxu1 %v3216_v43  ;;  %v3345_v43 = vld [vmem:[%s4476_s3 + $0x154] ss:$8 sps:$4 sm:$0xff]  }
  0xa9   : > { %1787 = vmatpush1.bf16.msra.mxu0 %v3217_v44  ;;  %v3343_v44 = vld [vmem:[%s4476_s3 + $0x150] ss:$8 sps:$4 sm:$0xff]  }
  0xaa   : > { %1826 = vmatpush1.bf16.msra.mxu1 %v3214_v46  ;;  %1788 = vmatprep.subr.bf16.mxu0 %v3225_v48  ;;  %v3306_v46 = vld [vmem:[%s4476_s3 + $0x24] ss:$8 sps:$4 sm:$0xff]   ;;  %v3304_v48 = vld [vmem:[%s4476_s3 + $0x20] ss:$8 sps:$4 sm:$0xff]  }
  0xab   : > { %1827 = vmatprep.subr.bf16.mxu1 %v3222_v47  ;;  %v3348_v47 = vld [vmem:[%s4476_s3 + $0x144] ss:$8 sps:$4 sm:$0xff]  }
  0xad   : > { %1789 = vmatpush1.bf16.msra.mxu0 %v3223_v50  ;;  %v3346_v50 = vld [vmem:[%s4476_s3 + $0x140] ss:$8 sps:$4 sm:$0xff]  }
  0xae   : > { %1828 = vmatpush1.bf16.msra.mxu1 %v3220_v49  ;;  %1790 = vmatprep.subr.bf16.mxu0 %v3231_v52  ;;  %v3309_v49 = vld [vmem:[%s4476_s3 + $0x14] ss:$8 sps:$4 sm:$0xff]   ;;  %v3312_v52 = vld [vmem:[%s4476_s3 + $0x4] ss:$8 sps:$4 sm:$0xff]  }
  0xaf   : > { %1829 = vmatprep.subr.bf16.mxu1 %v3228_v51  ;;  %v3307_v51 = vld [vmem:[%s4476_s3 + $0x10] ss:$8 sps:$4 sm:$0xff]  }
  0xb1   : > { %1791 = vmatpush1.bf16.msra.mxu0 %v3229_v55  ;;  %v3315_v55 = vld [vmem:[%s4476_s3 + $0xf4] ss:$8 sps:$4 sm:$0xff]  }
  0xb2   : > { %1830 = vmatpush1.bf16.msra.mxu1 %v3226_v53  ;;  %1792 = vmatprep.subr.bf16.mxu0 %v3237_v57  ;;  %v3310_v53 = vld [vmem:[%s4476_s3] ss:$8 sps:$4 sm:$0xff]   ;;  %v3318_v57 = vld [vmem:[%s4476_s3 + $0xe4] ss:$8 sps:$4 sm:$0xff]  }
  0xb3   : > { %1831 = vmatprep.subr.bf16.mxu1 %v3234_v56  ;;  %v3313_v56 = vld [vmem:[%s4476_s3 + $0xf0] ss:$8 sps:$4 sm:$0xff]  }
  0xb5   : > { %1793 = vmatpush2.bf16.msra.mxu0 %v3235_v59  ;;  %v3321_v59 = vld [vmem:[%s4476_s3 + $0xd4] ss:$8 sps:$4 sm:$0xff]  }
  0xb6   : > { %1832 = vmatpush1.bf16.msra.mxu1 %v3232_v58  ;;  %1794 = vmatprep.subr.bf16.mxu0 %v3243_v61  ;;  %v3316_v58 = vld [vmem:[%s4476_s3 + $0xe0] ss:$8 sps:$4 sm:$0xff]   ;;  %v3324_v61 = vld [vmem:[%s4476_s3 + $0xc4] ss:$8 sps:$4 sm:$0xff]  }
  0xb7   : > { %1833 = vmatprep.subr.bf16.mxu1 %v3240_v60  ;;  %v3319_v60 = vld [vmem:[%s4476_s3 + $0xd0] ss:$8 sps:$4 sm:$0xff]  }
  0xb9   : > { %1795 = vmatpush2.bf16.msra.mxu0 %v3241_v63  ;;  %v3327_v63 = vld [vmem:[%s4476_s3 + $0xb4] ss:$8 sps:$4 sm:$0xff]  }
  0xba   : > { %1834 = vmatpush1.bf16.msra.mxu1 %v3238_v62  ;;  %1796 = vmatprep.subr.bf16.mxu0 %v3249_v1  ;;  %v3322_v62 = vld [vmem:[%s4476_s3 + $0xc0] ss:$8 sps:$4 sm:$0xff]   ;;  %v3330_v1 = vld [vmem:[%s4476_s3 + $0xa4] ss:$8 sps:$4 sm:$0xff]  }
  0xbb   : > { %1835 = vmatprep.subr.bf16.mxu1 %v3246_v0  ;;  %v3325_v0 = vld [vmem:[%s4476_s3 + $0xb0] ss:$8 sps:$4 sm:$0xff]  }
  0xbd   : > { %1797 = vmatpush2.bf16.msra.mxu0 %v3247_v3  ;;  %v3333_v3 = vld [vmem:[%s4476_s3 + $0x94] ss:$8 sps:$4 sm:$0xff]  }
  0xbe   : > { %1836 = vmatpush2.bf16.msra.mxu1 %v3244_v2  ;;  %1798 = vmatprep.subr.bf16.mxu0 %v3255_v5  ;;  %v3328_v2 = vld [vmem:[%s4476_s3 + $0xa0] ss:$8 sps:$4 sm:$0xff]   ;;  %v3336_v5 = vld [vmem:[%s4476_s3 + $0x84] ss:$8 sps:$4 sm:$0xff]  }
  0xbf   : > { %1837 = vmatprep.subr.bf16.mxu1 %v3252_v4  ;;  %v3331_v4 = vld [vmem:[%s4476_s3 + $0x90] ss:$8 sps:$4 sm:$0xff]  }
  0xc1   : > { %1799 = vmatpush2.bf16.msra.mxu0 %v3253_v7  ;;  %v3351_v7 = vld [vmem:[%s4476_s3 + $0x134] ss:$8 sps:$4 sm:$0xff]  }
  0xc2   : > { %1838 = vmatpush2.bf16.msra.mxu1 %v3250_v6  ;;  %1800 = vmatprep.subr.bf16.mxu0 %v3261_v9  ;;  %v3334_v6 = vld [vmem:[%s4476_s3 + $0x80] ss:$8 sps:$4 sm:$0xff]   ;;  %v3354_v9 = vld [vmem:[%s4476_s3 + $0x124] ss:$8 sps:$4 sm:$0xff]  }
  0xc3   : > { %1839 = vmatprep.subr.bf16.mxu1 %v3258_v8  ;;  %v3349_v8 = vld [vmem:[%s4476_s3 + $0x130] ss:$8 sps:$4 sm:$0xff]  }
  0xc5   : > { %1801 = vmatpush2.bf16.msra.mxu0 %v3259_v11  ;;  %v3357_v11 = vld [vmem:[%s4476_s3 + $0x114] ss:$8 sps:$4 sm:$0xff]  }
  0xc6   : > { %1840 = vmatpush2.bf16.msra.mxu1 %v3256_v10  ;;  %1802 = vmatprep.subr.bf16.mxu0 %v3267_v15  ;;  %v3352_v10 = vld [vmem:[%s4476_s3 + $0x120] ss:$8 sps:$4 sm:$0xff]   ;;  %v3360_v15 = vld [vmem:[%s4476_s3 + $0x104] ss:$8 sps:$4 sm:$0xff]  }
  0xc7   : > { %1841 = vmatprep.subr.bf16.mxu1 %v3264_v14  ;;  %v3355_v14 = vld [vmem:[%s4476_s3 + $0x110] ss:$8 sps:$4 sm:$0xff]  }
  0xc9   : > { %1803 = vmatpush2.bf16.msra.mxu0 %v3265_v17  ;;  %v1965_v17 = vld [vmem:[%s4476_s3 + $0x180] sm:$0xff] }
  0xca   : > { %1842 = vmatpush2.bf16.msra.mxu1 %v3262_v16  ;;  %1804 = vmatprep.subr.bf16.mxu0 %v3273_v19  ;;  %v3358_v16 = vld [vmem:[%s4476_s3 + $0x100] ss:$8 sps:$4 sm:$0xff]   ;;  %v2902_v19 = vcombine.low %v1965_v17, %v1965_v17 }
  0xcb   : > { %1843 = vmatprep.subr.bf16.mxu1 %v3270_v18  ;;  %v2903_v18 = vcombine.high %v1965_v17, %v1965_v17 }
  0xcd   : > { %1805 = vmatpush2.bf16.msra.mxu0 %v3271_v22 }
  0xce   : > { %1844 = vmatpush2.bf16.msra.mxu1 %v3268_v20  ;;  %1806 = vmatprep.subr.bf16.mxu0 %v3279_v25  ;;  %v2229_v20 = vsel %vm2227_vm1, %v2902_v19, 0 }
  0xcf   : > { %1845 = vmatprep.subr.bf16.mxu1 %v3276_v24  ;;  %v557_v24 = vlaneseq }
  0xd1   : > { %1807 = vmatpush2.bf16.msra.mxu0 %v3277_v28 }
  0xd2   : > { %1846 = vmatpush2.bf16.msra.mxu1 %v3274_v27  ;;  %1876 = vmatprep.subr.bf16.mxu0 %v3285_v30  ;;  %v4334_v27 = vshrl.u32 %v557_v24, 7 }
  0xd3   : > { %1847 = vmatprep.subr.bf16.mxu1 %v3282_v29 }
  0xd4   : > { %1809 = vmatmul.mubr.bf16.vlgmr.msra.gmra.mxu0 %v3766_v13  ;;  %v3292_v13 = vld [vmem:[%s4476_s3 + $0x60] ss:$8 sps:$4 sm:$0xff]   ;;  %v563_v30 = vsub.s32 1, %v4334_v27 }
  0xd5   : > { %1877 = vmatpush1.bf16.msra.mxu0 %v3283_v32  ;;  %1894 = vmatprep.mubr.bf16.mxu0 %v3442_v21 }
  0xd6   : > { %1848 = vmatpush2.bf16.msra.mxu1 %v3280_v31  ;;  %2234 = vmatprep.subr.bf16.mxu0 %v3291_v34  ;;  %v559_v31 = vsub.s32 0, %v4334_v27 }
  0xd7   : > { %1849 = vmatprep.subr.bf16.mxu1 %v3288_v33  ;;  %v555_v33 = vld [vmem:[%s4475_s2] sm:$0xf] }
  0xda   : > { %1850 = vmatpush2.bf16.msra.mxu1 %v3286_v35  ;;  %v564_v35 = vrot.slane %v555_v33, %v563_v30 }
  0xdb   : > { %2277 = vmatprep.subr.bf16.mxu1 %v3339_v54 }
  0xdc   : > { %2853 = vmatmul.mubr.msk.bf16.vlgmr.msra.gmra.mxu0 %vm1557_vm0, %v3791_v23  ;;  %v3300_v23 = vld [vmem:[%s4476_s3 + $0x44] ss:$8 sps:$4 sm:$0xff]  }
  0xdd   : > { %1852 = vmatmul.mubr.bf16.vlgmr.msra.gmra.mxu1 %v3971_v26  ;;  %2235 = vmatpush1.bf16.msra.mxu0 %v3289_v36  ;;  %v3337_v26 = vld [vmem:[%s4476_s3 + $0x170] ss:$8 sps:$4 sm:$0xff]   ;;  %v560_v36 = vrot.slane %v555_v33, %v559_v31 }
  0xde   : > { %2236 = vmatprep.subr.bf16.mxu0 %v3294_v37  ;;  %2278 = vmatpush1.bf16.msra.mxu1 %v3337_v26 }
  0xdf   : > { %2279 = vmatprep.subr.bf16.mxu1 %v3342_v41 }
  0xe1   : > { %2237 = vmatpush1.bf16.msra.mxu0 %v3292_v13 }
  0xe2   : > { %2238 = vmatprep.subr.bf16.mxu0 %v3297_v38  ;;  %2280 = vmatpush1.bf16.msra.mxu1 %v3340_v12 }
  0xe3   : > { %2281 = vmatprep.subr.bf16.mxu1 %v3345_v43 }
  0xe5   : > { %2239 = vmatpush1.bf16.msra.mxu0 %v3295_v39 }
  0xe6   : > { %2240 = vmatprep.subr.bf16.mxu0 %v3300_v23  ;;  %2282 = vmatpush1.bf16.msra.mxu1 %v3343_v44 }
  0xe7   : > { %2283 = vmatprep.subr.bf16.mxu1 %v3348_v47 }
  0xe9   : > { %2241 = vmatpush1.bf16.msra.mxu0 %v3298_v40 }
  0xea   : > { %2242 = vmatprep.subr.bf16.mxu0 %v3303_v42  ;;  %2284 = vmatpush1.bf16.msra.mxu1 %v3346_v50 }
  0xeb   : > { %2285 = vmatprep.subr.bf16.mxu1 %v3351_v7 }
  0xed   : > { %2243 = vmatpush1.bf16.msra.mxu0 %v3301_v45 }
  0xee   : > { %2244 = vmatprep.subr.bf16.mxu0 %v3306_v46  ;;  %2286 = vmatpush1.bf16.msra.mxu1 %v3349_v8 }
  0xef   : > { %2287 = vmatprep.subr.bf16.mxu1 %v3354_v9 }
  0xf1   : > { %2245 = vmatpush1.bf16.msra.mxu0 %v3304_v48 }
  0xf2   : > { %2246 = vmatprep.subr.bf16.mxu0 %v3309_v49  ;;  %2288 = vmatpush1.bf16.msra.mxu1 %v3352_v10 }
  0xf3   : > { %2289 = vmatprep.subr.bf16.mxu1 %v3357_v11 }
  0xf5   : > { %2247 = vmatpush1.bf16.msra.mxu0 %v3307_v51 }
  0xf6   : > { %2248 = vmatprep.subr.bf16.mxu0 %v3312_v52  ;;  %2290 = vmatpush1.bf16.msra.mxu1 %v3355_v14 }
  0xf7   : > { %2291 = vmatprep.subr.bf16.mxu1 %v3360_v15 }
  0xf9   : > { %2249 = vmatpush1.bf16.msra.mxu0 %v3310_v53 }
  0xfa   : > { %2250 = vmatprep.subr.bf16.mxu0 %v3315_v55  ;;  %2292 = vmatpush1.bf16.msra.mxu1 %v3358_v16 }
  0xfb   : > { %2904 = vmatprep.subr.msk.bf16.mxu1 %vm2227_vm1, %v2903_v18 }
  0xfd   : > { %2251 = vmatpush2.bf16.msra.mxu0 %v3313_v56 }
  0xfe   : > { %2252 = vmatprep.subr.bf16.mxu0 %v3318_v57  ;;  %2308 = vmatpush2.bf16.msra.mxu1 %v2229_v20 }
  0xff   : > { %2441 = vmatprep.subr.bf16.mxu1 %v3442_v21 }
 0x101   : > { %2253 = vmatpush2.bf16.msra.mxu0 %v3316_v58 }
 0x102   : > { %2254 = vmatprep.subr.bf16.mxu0 %v3321_v59 }
 0x105   : > { %2255 = vmatpush2.bf16.msra.mxu0 %v3319_v60 }
 0x106   : > { %2256 = vmatprep.subr.bf16.mxu0 %v3324_v61 }
 0x109   : > { %2257 = vmatpush2.bf16.msra.mxu0 %v3322_v62 }
 0x10a   : > { %2258 = vmatprep.subr.bf16.mxu0 %v3327_v63 }
 0x10d   : > { %2259 = vmatpush2.bf16.msra.mxu0 %v3325_v0 }
 0x10e   : > { %2260 = vmatprep.subr.bf16.mxu0 %v3330_v1 }
 0x111   : > { %2261 = vmatpush2.bf16.msra.mxu0 %v3328_v2 }
 0x112   : > { %2262 = vmatprep.subr.bf16.mxu0 %v3333_v3  ;;  %v571_v3 = vsub.s32 3, %v4334_v27 }
 0x114   : > { %v1595_v28 = vpop.f32.mrf.mxu0  ;;  %v572_v8 = vrot.slane %v555_v33, %v571_v3  ;;  %v1966_v3 = vld [vmem:[%s4477_s4] sm:$0x3] }
 0x115   : > { %2263 = vmatpush2.bf16.msra.mxu0 %v3331_v4  ;;  %v1638_v22 = vpop.f32.mrf.mxu1  ;;  %v1596_v39 = vadd.f32 %v1595_v28, %v560_v36  ;;  %v567_v4 = vsub.s32 2, %v4334_v27 }
 0x116   : > { %2264 = vmatprep.subr.bf16.mxu0 %v3336_v5  ;;  %v1597_v32 = vpop.f32.mrf.mxu0 }
 0x117   : > { %v1640_v25 = vpop.f32.mrf.mxu1  ;;  %v1598_v38 = vadd.f32 %v1597_v32, %v564_v35  ;;  %v1639_v12 = vadd.f32 %v1638_v22, %v1596_v39  ;;  %v568_v9 = vrot.slane %v555_v33, %v567_v4 }
 0x118   : > { %v1599_v37 = vpop.f32.mrf.mxu0 }
 0x119   : > { %2265 = vmatpush2.bf16.msra.mxu0 %v3334_v6  ;;  %v1642_v29 = vpop.f32.mrf.mxu1  ;;  %v1600_v26 = vadd.f32 %v1599_v37, %v560_v36  ;;  %v1641_v41 = vadd.f32 %v1640_v25, %v1598_v38 }
 0x11a   : > { %v1601_v23 = vpop.f32.mrf.mxu0 }
 0x11b   : > { %v1644_v34 = vpop.f32.mrf.mxu1  ;;  %v1602_v42 = vadd.f32 %v1601_v23, %v564_v35  ;;  %v1643_v45 = vadd.f32 %v1642_v29, %v1600_v26 }
 0x11d   : > { %v1724_v13 = vpop.f32.mrf.mxu1  ;;  %v1645_v49 = vadd.f32 %v1644_v34, %v1602_v42 }
 0x11f   : > { %v1726_v54 = vpop.f32.mrf.mxu1 }
 0x121   : > { %v1728_v44 = vpop.f32.mrf.mxu1 }
 0x123   : > { %v1730_v56 = vpop.f32.mrf.mxu1 }
 0x154   : > { %v1681_v40 = vpop.f32.mrf.mxu0 }
 0x155   : > { %v1682_v47 = vadd.f32 %v1681_v40, %v1639_v12 }
 0x156   : > { %v1683_v43 = vpop.f32.mrf.mxu0 }
 0x157   : > { %v1684_v46 = vadd.f32 %v1683_v43, %v1641_v41  ;;  %v1725_v57 = vadd.f32 %v1724_v13, %v1682_v47  ;;  %v3364_v47 = vld [vmem:[%s4478_s5 + $0x30] sm:$0xff]  }
 0x158   : > { %v1685_v48 = vpop.f32.mrf.mxu0 }
 0x159   : > { %v1686_v50 = vadd.f32 %v1685_v48, %v1643_v45  ;;  %v1727_v52 = vadd.f32 %v1726_v54, %v1684_v46  ;;  %v1905_v62 = vmax.f32 %v1725_v57, 0.0  ;;  %v3365_v48 = vld [vmem:[%s4478_s5 + $0x28] sm:$0xff]   ;;  %v3372_v57 = vld [vmem:[%s4478_s5 + $0x58] sm:$0xff]  }
 0x15a   : > { %v1687_v51 = vpop.f32.mrf.mxu0 }
 0x15b   : > { %v1729_v53 = vadd.f32 %v1728_v44, %v1686_v50  ;;  %v1688_v55 = vadd.f32 %v1687_v51, %v1645_v49  ;;  %v1906_v60 = vmax.f32 %v1727_v52, 0.0  ;;  %v3363_v44 = vld [vmem:[%s4478_s5 + $0x38] sm:$0xff]   ;;  %v3366_v49 = vld [vmem:[%s4478_s5 + $0x20] sm:$0xff]   ;;  %v3368_v51 = vld [vmem:[%s4478_s5 + $0x10] sm:$0xff]  }
 0x15c   : > { %v3367_v50 = vld [vmem:[%s4478_s5 + $0x18] sm:$0xff]   ;;  %v3369_v52 = vld [vmem:[%s4478_s5 + $0x8] sm:$0xff]  }
 0x15d   : > { %v1731_v58 = vadd.f32 %v1730_v56, %v1688_v55  ;;  %v1909_v59 = vmax.f32 %v1729_v53, 0.0  ;;  %v1767_v1 = vpop.f32.mrf.mxu1  ;;  %v3370_v53 = vld [vmem:[%s4478_s5] sm:$0xff]  }
 0x15e   : > { %v1768_v16 = vadd.f32 %v1767_v1, %v568_v9  ;;  %v3371_v55 = vld [vmem:[%s4478_s5 + $0x60] ss:$0 sps:$4 sm:$0x33]  }
 0x15f   : > { %v1910_v61 = vmax.f32 %v1731_v58, 0.0  ;;  %v1913_v0 = vpack.c.bf16 %v1909_v59, %v1905_v62  ;;  %v1769_v2 = vpop.f32.mrf.mxu1  ;;  %v2439_v56 = vsel %vm2437_vm3, %v3371_v55, 0  ;;  %v3373_v58 = vld [vmem:[%s4478_s5 + $0x50] sm:$0xff]   ;;  %v3374_v59 = vld [vmem:[%s4478_s5 + $0x48] sm:$0xff]   ;;  %v3443_v62 = vmov 0.0  }
 0x160   : > { %v1770_v15 = vadd.f32 %v1769_v2, %v572_v8  ;;  %2938 = vmatprep.subr.bf16.mxu0 %v3443_v62 }
 0x161   : > { %v1914_v63 = vpack.c.bf16 %v1910_v61, %v1906_v60  ;;  %v1771_v6 = vpop.f32.mrf.mxu1  ;;  %v3375_v60 = vld [vmem:[%s4478_s5 + $0x40] sm:$0xff]   ;;  %v3376_v61 = vld [vmem:[%s4480_s7 + $0x18] ss:$0 sps:$4 sm:$0x11]  }
 0x162   : > { %v1772_v19 = vadd.f32 %v1771_v6, %v568_v9  ;;  %v1971_v6 = vrot.slane %v1966_v3, %v559_v31 }
 0x163   : > { %2266 = vmatprep.mubr.bf16.mxu0 %v1914_v63  ;;  %v1773_v11 = vpop.f32.mrf.mxu1  ;;  %v2526_v63 = vsel %vm2524_vm4, 65535, %v3442_v21 }
 0x164   : > { %2267 = vmatmul.mubr.bf16.vlgmr.msra.gmra.mxu0 %v1913_v0  ;;  %v1774_v28 = vadd.f32 %v1773_v11, %v572_v8  ;;  %v2528_v0 = vand.u32 %v3376_v61, %v2526_v63 }
 0x165   : > { %2946 = vmatprep.mubr.msk.bf16.mxu0 %vm3444_vm6, %v3443_v62 }
 0x166   : > { %2939 = vmatpush3.bf16.msra.mxu0 %v2528_v0 }
 0x167   : > { %2940 = vmatprep.subr.bf16.mxu0 %v3443_v62 }
 0x194   : > { %v1810_v5 = vpop.f32.mrf.mxu0 }
 0x195   : > { %v1811_v22 = vadd.f32 %v1810_v5, %v1768_v16  ;;  %v1975_v5 = vrot.slane %v1966_v3, %v563_v30 }
 0x196   : > { %v1812_v7 = vpop.f32.mrf.mxu0 }
 0x197   : > { %v1813_v20 = vadd.f32 %v1812_v7, %v1770_v15 }
 0x198   : > { %v1814_v10 = vpop.f32.mrf.mxu0 }
 0x199   : > { %v1815_v29 = vadd.f32 %v1814_v10, %v1772_v19 }
 0x19a   : > { %v1816_v14 = vpop.f32.mrf.mxu0 }
 0x19b   : > { %v1817_v37 = vadd.f32 %v1816_v14, %v1774_v28  ;;  %v3377_v28 = vld [vmem:[%s4480_s7 + $0x10] sm:$0xff]  }
 0x19c   : > { %v1896_v18 = vpop.f32.mrf.mxu0  ;;  %2941 = vmatpush3.bf16.msra.mxu0 %v3377_v28 }
 0x19d   : > { %v1853_v17 = vpop.f32.mrf.mxu1  ;;  %2942 = vmatprep.subr.bf16.mxu0 %v3443_v62 }
 0x19e   : > { %v1898_v25 = vpop.f32.mrf.mxu0  ;;  %v1854_v34 = vadd.f32 %v1853_v17, %v1811_v22 }
 0x19f   : > { %v1855_v24 = vpop.f32.mrf.mxu1 }
 0x1a0   : > { %v1856_v32 = vadd.f32 %v1855_v24, %v1813_v20  ;;  %v1900_v36 = vpop.f32.mrf.mxu0  ;;  %v1897_v54 = vadd.f32 %v1896_v18, %v1854_v34  ;;  %v2906_v34 = vld [vmem:[%s4479_s6] ss:$0 sm:$0xff] }
 0x1a1   : > { %v1857_v35 = vpop.f32.mrf.mxu1 }
 0x1a2   : > { %v1858_v33 = vadd.f32 %v1857_v35, %v1815_v29  ;;  %v1902_v38 = vpop.f32.mrf.mxu0  ;;  %v1899_v39 = vadd.f32 %v1898_v25, %v1856_v32  ;;  %v1907_v43 = vmax.f32 %v1897_v54, 0.0  ;;  %v3378_v29 = vld [vmem:[%s4480_s7 + $0x8] sm:$0xff]   ;;  %v3379_v32 = vld [vmem:[%s4480_s7] sm:$0xff]  }
 0x1a3   : > { %v1859_v13 = vpop.f32.mrf.mxu1  ;;  %2943 = vmatpush3.bf16.msra.mxu0 %v3378_v29  ;;  %v2921_v54 = vld [vmem:[%s4481_s8] ss:$0 sm:$0xff] }
 0x1a4   : > { %v1901_v23 = vadd.f32 %v1900_v36, %v1858_v33  ;;  %v1860_v26 = vadd.f32 %v1859_v13, %v1817_v37  ;;  %v1908_v42 = vmax.f32 %v1899_v39, 0.0  ;;  %2944 = vmatprep.subr.bf16.mxu0 %v3443_v62 }
 0x1a6   : > { %v1903_v40 = vadd.f32 %v1902_v38, %v1860_v26  ;;  %v1911_v41 = vmax.f32 %v1901_v23, 0.0 }
 0x1a7   : > { %2945 = vmatpush3.bf16.msra.mxu0 %v3379_v32 }
 0x1a8   : > { %v1912_v12 = vmax.f32 %v1903_v40, 0.0  ;;  %v1915_v46 = vpack.c.bf16 %v1911_v41, %v1907_v43 }
 0x1aa   : > { %v1916_v45 = vpack.c.bf16 %v1912_v12, %v1908_v42 }
 0x1ac   : > { %2905 = vmatprep.mubr.msk.bf16.mxu1 %vm2223_vm2, %v1916_v45 }
 0x1ad   : > { %2310 = vmatmul.mubr.bf16.vlgmr.msra.gmra.mxu1 %v1915_v46 }
 0x1ae   : > { %2442 = vmatpush1.bf16.msra.mxu1 %v3363_v44 }
 0x1af   : > { %2443 = vmatprep.subr.bf16.mxu1 %v3442_v21 }
 0x1b2   : > { %2444 = vmatpush1.bf16.msra.mxu1 %v3364_v47 }
 0x1b3   : > { %2445 = vmatprep.subr.bf16.mxu1 %v3442_v21 }
 0x1b6   : > { %2446 = vmatpush1.bf16.msra.mxu1 %v3365_v48 }
 0x1b7   : > { %2447 = vmatprep.subr.bf16.mxu1 %v3442_v21 }
 0x1ba   : > { %2448 = vmatpush1.bf16.msra.mxu1 %v3366_v49 }
 0x1bb   : > { %2449 = vmatprep.subr.bf16.mxu1 %v3442_v21 }
 0x1be   : > { %2450 = vmatpush1.bf16.msra.mxu1 %v3367_v50 }
 0x1bf   : > { %2451 = vmatprep.subr.bf16.mxu1 %v3442_v21 }
 0x1c2   : > { %2452 = vmatpush1.bf16.msra.mxu1 %v3368_v51 }
 0x1c3   : > { %2453 = vmatprep.subr.bf16.mxu1 %v3442_v21 }
 0x1c6   : > { %2454 = vmatpush1.bf16.msra.mxu1 %v3369_v52 }
 0x1c7   : > { %2455 = vmatprep.subr.bf16.mxu1 %v3442_v21 }
 0x1ca   : > { %2456 = vmatpush1.bf16.msra.mxu1 %v3370_v53 }
 0x1cb   : > { %2463 = vmatprep.subr.bf16.mxu1 %v3442_v21 }
 0x1ce   : > { %2464 = vmatpush2.bf16.msra.mxu1 %v2439_v56 }
 0x1cf   : > { %2465 = vmatprep.subr.bf16.mxu1 %v3442_v21 }
 0x1d2   : > { %2466 = vmatpush2.bf16.msra.mxu1 %v3372_v57 }
 0x1d3   : > { %2467 = vmatprep.subr.bf16.mxu1 %v3442_v21 }
 0x1d6   : > { %2468 = vmatpush2.bf16.msra.mxu1 %v3373_v58 }
 0x1d7   : > { %2469 = vmatprep.subr.bf16.mxu1 %v3442_v21 }
 0x1da   : > { %2470 = vmatpush2.bf16.msra.mxu1 %v3374_v59 }
 0x1db   : > { %2471 = vmatprep.subr.bf16.mxu1 %v3442_v21 }
 0x1de   : > { %2472 = vmatpush2.bf16.msra.mxu1 %v3375_v60 }
 0x224   : > { %v2268_v1 = vpop.f32.mrf.mxu0 }
 0x225   : > { %v2269_v11 = vadd.f32 %v2268_v1, %v1971_v6 }
 0x226   : > { %v2270_v2 = vpop.f32.mrf.mxu0 }
 0x227   : > { %v2271_v21 = vadd.f32 %v2270_v2, %v1975_v5 }
 0x228   : > { %v2272_v4 = vpop.f32.mrf.mxu0 }
 0x229   : > { %v2273_v10 = vadd.f32 %v2272_v4, %v1971_v6 }
 0x22a   : > { %v2274_v8 = vpop.f32.mrf.mxu0 }
 0x22b   : > { %v2275_v15 = vadd.f32 %v2274_v8, %v1975_v5 }
 0x26d   : > { %v2311_v7 = vpop.f32.mrf.mxu1 }
 0x26e   : > { %v2312_v18 = vadd.f32 %v2311_v7, %v2269_v11 }
 0x26f   : > { %v2313_v9 = vpop.f32.mrf.mxu1 }
 0x270   : > { %v2314_v16 = vadd.f32 %v2313_v9, %v2271_v21  ;;  %v2320_v30 = vmax.f32 %v2312_v18, 0.0 }
 0x271   : > { %v2315_v14 = vpop.f32.mrf.mxu1 }
 0x272   : > { %v2316_v17 = vadd.f32 %v2315_v14, %v2273_v10  ;;  %v2321_v24 = vmax.f32 %v2314_v16, 0.0 }
 0x273   : > { %v2317_v19 = vpop.f32.mrf.mxu1 }
 0x274   : > { %v2318_v20 = vadd.f32 %v2317_v19, %v2275_v15  ;;  %v2322_v22 = vmax.f32 %v2316_v17, 0.0 }
 0x276   : > { %v2323_v25 = vmax.f32 %v2318_v20, 0.0  ;;  %v2324_v31 = vpack.c.bf16 %v2322_v22, %v2320_v30 }
 0x278   : > { %v2325_v27 = vpack.c.bf16 %v2323_v25, %v2321_v24 }
 0x27a   : > { %2920 = vmatprep.mubr.msk.bf16.mxu1 %vm2433_vm5, %v2325_v27 }
 0x27b   : > { %2474 = vmatmul.mubr.bf16.vlgmr.msra.gmra.mxu1 %v2324_v31 }
 0x33b   : > { %v2475_v35 = vpop.f32.mrf.mxu1 }
 0x33c   : > { %v2476_v37 = vadd.f32 %v2906_v34, %v2475_v35 }
 0x33d   : > { %v2477_v36 = vpop.f32.mrf.mxu1 }
 0x33e   : > { %v2482_v39 = vmax.f32 %v2476_v37, 0.0 }
 0x33f   : > { %v2478_v33 = vpop.f32.mrf.mxu1 }
 0x340   : > { %v2479_v13 = vadd.f32 %v2906_v34, %v2478_v33 }
 0x341   : > { %v2480_v38 = vpop.f32.mrf.mxu1 }
 0x342   : > { %v2483_v23 = vmax.f32 %v2479_v13, 0.0 }
 0x344   : > { %v2484_v26 = vpack.c.bf16 %v2483_v23, %v2482_v39 }
 0x346   : > { %2947 = vmatmul.mubr.msk.bf16.vlgmr.msra.gmra.mxu0 %vm2520_vm7, %v2484_v26 }
 0x406   : > { %v2564_v40 = vpop.f32.mrf.mxu0 }
 0x407   : > { %v2565_v41 = vadd.f32 %v2921_v54, %v2564_v40 }
 0x408   : > { %v2948_v42 = vpop.f32.mrf.mxu0 }
 0x409   : > { %2571 = vst [vmem:[%s328_s25] sm:$0xff] %v2565_v41 }
 0x40a   : > { %v2567_v12 = vpop.f32.mrf.mxu0 }
 0x40b   : > { %v2568_v43 = vadd.f32 %v2921_v54, %v2567_v12 }
 0x40c   : > { %v2949_v45 = vpop.f32.mrf.mxu0 }
 0x40d   : > { %2572 = vst [vmem:[%s328_s25 + $0x8] sm:$0xff] %v2568_v43 }
 0x40e   : > { %3393 = shalt.err (!%p3390_p3)
}
 0x40f   : > { %s3394_s22 = scalar_lea.hbm %s4431_s28, 256  ;;  %s3398_s26 = scalar_lea.hbm %s4482_s9, 512 }
 0x410   : > { %p3395_p4 = scmp.ne.s32.totalorder %s4431_s28, %s3394_s22  ;;  %p3399_p9 = scmp.lt.s32.totalorder %s4431_s28, %s4482_s9 }
 0x411   : > { %p3400_p10 = scmp.lt.s32.totalorder %s3398_s26, %s3394_s22 }
 0x412   : > { %p3396_p7 = pnand %p3395_p4, %p3536_p5 }
 0x413   : > { %p3401_p11 = por %p3400_p10, %p3399_p9 }
 0x414   : > { %p3397_p8 = pneg %p3396_p7 }
 0x416   : > { %p3402_p12 = pnand %p3401_p11, %p3397_p8 }
 0x418   : > { %3405 = shalt.err (!%p3402_p12)
}
 0x419   : > { %s3446_s21 = smov 128   ;;  %s3447_s13 = smov 8  }
 0x41a   : > { %2951 = dma.vmem_to_hbm [thread:$0]  (%p3536_p5), %s4426_s17, 256, %s4431_s28, %s4433_s14, %s3446_s21, %s3446_s21, %s3447_s13  }
 0x41b PF: > { %p2957_p13 = scmp.ge.s32.totalorder %s3440_s12, 2  ;;  %s2602_s23 = sand.u32 1, %s3428_s30  }
 0x41c   : > { %s2603_s24 = scalar_lea.sflag [#allocation3], %s2602_s23 }
 0x41d   : > { %p2954_p0 = pnand %p2957_p13, %p3540_p6 }
 0x41f   : > { %p2955_p1 = pneg %p2954_p0 }
 0x421   : > { %3423 = dma.done.wait (%p2955_p1), %s2603_s24, 256  }
 0x422   : > { %3425 = vsyncadd (%p2955_p1), %s2603_s24, 4294967040  ;;  %p19_p2 = scmp.ge.s32.totalorder %s3523_s15, 4   ;;  %s4485_s30 = smov %s3432_s10 }
 0x423   : > { %s4486_s10 = smov %s3436_s11  ;;  %s4487_s11 = smov %s3534_s18 }
 0x424   : > { %s4488_s12 = smov %s3523_s15  ;;  %21 = sbr.rel (!%p19_p2) target bundleno = 3 (0x3), region = 91 }
 0x429   :  { %2608 = vsyncpa [#allocation3], 1 }
 0x42a   :  { %2610 = vsyncpa [#allocation3 + $0x1], 1 }

</bundles_post_ra>
